<compile_context>
chip_gen: v5e
topology: v5e:2x2
jax: 0.10.0
libtpu: 0.0.40
codegen_flags: <defaults>
</compile_context>

<pallas_src>
import functools
import numpy as np
import jax
import jax.numpy as jnp
from jax import lax
from jax.experimental import pallas as pl
from jax.experimental.pallas import tpu as pltpu

# ----------------------------- configuration --------------------------------
B = 8                                   # batch
NUM_NUMERICAL = 3                       # num_numerical_features
NUM_CLASSES = np.array([4, 5, 3])       # per-categorical-feature class counts
N_CAT = len(NUM_CLASSES)
D_CAT = int(NUM_CLASSES.sum())          # total one-hot width
D_IN = NUM_NUMERICAL + D_CAT            # denoiser in/out width
HIDDEN = 32
NUM_TIMESTEPS = 10
NUM_Y = 2

# constant tables
_num_classes_expanded = np.concatenate(
    [np.full(int(k), float(k)) for k in NUM_CLASSES])
NLOGK = jnp.asarray(-np.log(_num_classes_expanded)[None, :], jnp.float32)   # (1, D_CAT)

_offsets = np.concatenate([[0], np.cumsum(NUM_CLASSES)]).astype(int)
_mask_np = np.zeros((N_CAT, D_CAT), np.float32)
_lclass_np = np.zeros((1, D_CAT), np.int32)
for _i in range(N_CAT):
    _mask_np[_i, _offsets[_i]:_offsets[_i + 1]] = 1.0
    _lclass_np[0, _offsets[_i]:_offsets[_i + 1]] = np.arange(int(NUM_CLASSES[_i]))
MASK = jnp.asarray(_mask_np)                 # (N_CAT, D_CAT) slice membership
MASK_T = jnp.asarray(_mask_np.T.copy())      # (D_CAT, N_CAT)
LCLASS = jnp.asarray(_lclass_np)             # (1, D_CAT) per-lane local class index

_VMEM = pl.BlockSpec(memory_space=pltpu.MemorySpace.VMEM)


# ------------------------------ fused kernel ---------------------------------
def _log_add_exp(a, b):
    m = jnp.maximum(a, b)
    return m + jnp.log(jnp.exp(a - m) + jnp.exp(b - m))


def fused_tabddpm_kernel(
        # compile-time constants (bound via functools.partial)
        n_cat, num_timesteps, num_numerical, lca_T, lomca_T,
        # VMEM inputs
        t_ref, y_ref, x_num_ref, x_cat_ref, noise_ref, unif_ref,
        coef_ref, nlogk_ref, mask_ref, mask_t_ref, lclass_ref,
        w1n_ref, w1c_ref, b1_ref, w2n_ref, w2c_ref, b2n_ref, b2c_ref,
        et_ref, ey_ref,
        # VMEM (1,1) outputs
        multi_ref, gauss_ref):
    mask = mask_ref[...]                  # (N_CAT, D_CAT)
    mask_t = mask_t_ref[...]              # (D_CAT, N_CAT)
    nlogk = nlogk_ref[...]                # (1, D_CAT)
    lclass = lclass_ref[...]              # (1, D_CAT) int32
    d_cat = mask.shape[1]

    def sliced_max_bcast(v):
        # per-categorical-slice max, broadcast back over each slice's lanes
        mxb = jnp.zeros_like(v)
        for s in range(n_cat):
            ms = mask[s:s + 1, :]
            vm = jnp.where(ms > 0.0, v, -1e30)
            mx = jnp.max(vm, axis=1, keepdims=True)
            mxb = mxb + mx * ms
        return mxb

    def sliced_lse(v):
        # per-slice logsumexp: one masked max pass, then per-slice sums via MXU
        mxb = sliced_max_bcast(v)
        e = jnp.exp(v - mxb)
        ssum = jnp.dot(e, mask_t, preferred_element_type=jnp.float32)     # (B, N_CAT)
        ssum_b = jnp.dot(ssum, mask, preferred_element_type=jnp.float32)  # (B, D_CAT)
        return mxb + jnp.log(ssum_b)

    # --- per-row gathers via one-hot(t) / one-hot(y) matmuls (MXU) ---
    t = t_ref[...]                        # (B, 1) int32
    y = y_ref[...]                        # (B, 1) int32
    bsz = t.shape[0]
    nt = coef_ref.shape[0]
    ny = ey_ref.shape[0]
    onehot_t = (lax.broadcasted_iota(jnp.int32, (bsz, nt), 1) == t).astype(jnp.float32)
    onehot_y = (lax.broadcasted_iota(jnp.int32, (bsz, ny), 1) == y).astype(jnp.float32)

    coeffs = jnp.dot(onehot_t, coef_ref[...], preferred_element_type=jnp.float32)  # (B, 8)
    sqrt_ca = coeffs[:, 0:1]
    sqrt_omca = coeffs[:, 1:2]
    lca = coeffs[:, 2:3]
    lomca = coeffs[:, 3:4]
    la = coeffs[:, 4:5]
    loma = coeffs[:, 5:6]
    lca_tm1 = coeffs[:, 6:7]
    lomca_tm1 = coeffs[:, 7:8]
    t0 = onehot_t[:, 0:1]                 # 1.0 where t == 0 (exact {0,1})

    # --- gaussian q-sample ---
    x_num_0 = x_num_ref[...]
    noise = noise_ref[...]
    x_num_t = sqrt_ca * x_num_0 + sqrt_omca * noise

    # --- log one-hot encoding of the input categories ---
    xc = x_cat_ref[...]                   # (B, N_CAT) int32
    oh = jnp.zeros((bsz, d_cat), jnp.float32)
    for s in range(n_cat):
        oh = oh + (xc[:, s:s + 1] == lclass).astype(jnp.float32) * mask[s:s + 1, :]
    log_x0 = jnp.log(jnp.maximum(oh, 1e-30))

    # --- multinomial q-sample: q-prior at t, then Gumbel-max per slice ---
    log_dist = _log_add_exp(log_x0 + lca, lomca + nlogk)
    u = unif_ref[...]                                          # (B, D_CAT) uniform [0,1)
    gumbel = -jnp.log(-jnp.log(u + 1e-30) + 1e-30)
    v = gumbel + log_dist
    samp = (v == sliced_max_bcast(v)).astype(jnp.float32)      # one-hot argmax per slice
    log_xt = jnp.log(jnp.maximum(samp, 1e-30))

    # --- denoiser MLP (split weights avoid in-kernel lane concat/slice) ---
    temb = jnp.dot(onehot_t, et_ref[...], preferred_element_type=jnp.float32)
    yemb = jnp.dot(onehot_y, ey_ref[...], preferred_element_type=jnp.float32)
    h = (jnp.dot(x_num_t, w1n_ref[...], preferred_element_type=jnp.float32)
         + jnp.dot(log_xt, w1c_ref[...], preferred_element_type=jnp.float32)
         + b1_ref[...] + temb + yemb)
    h = jnp.maximum(h, 0.0)
    pred_num = jnp.dot(h, w2n_ref[...], preferred_element_type=jnp.float32) + b2n_ref[...]
    pred_cat = jnp.dot(h, w2c_ref[...], preferred_element_type=jnp.float32) + b2c_ref[...]

    # --- multinomial_x_0_from_pred: per-slice log_softmax ---
    log_x0_hat = pred_cat - sliced_lse(pred_cat)

    # --- q-posterior at (t-1 | t); one-step term shared by true & estimated dists ---
    one_step = _log_add_exp(log_xt + la, loma + nlogk)

    def posterior(lx0):
        prior_tm1 = _log_add_exp(lx0 + lca_tm1, lomca_tm1 + nlogk)
        log_ev = t0 * lx0 + (1.0 - t0) * prior_tm1      # where(t==0, log_x0, prior)
        unnormed = log_ev + one_step
        return unnormed - sliced_lse(unnormed)

    log_true = posterior(log_x0)
    log_est = posterior(log_x0_hat)

    # --- losses (all reduced fully in-kernel) ---
    kl = jnp.sum(jnp.exp(log_true) * (log_true - log_est), axis=1, keepdims=True)
    nll = -jnp.sum(jnp.exp(log_x0) * log_est, axis=1, keepdims=True)
    log_qxT = _log_add_exp(log_x0 + lca_T, lomca_T + nlogk)
    kl_prior = jnp.sum(jnp.exp(log_qxT) * (log_qxT - nlogk), axis=1, keepdims=True)
    diff = t0 * nll + (1.0 - t0) * kl
    multi_row = diff * float(num_timesteps) + kl_prior          # (B, 1)

    d = pred_num - noise
    multi_ref[...] = jnp.sum(multi_row, keepdims=True) * (1.0 / float(bsz))
    gauss_ref[...] = (jnp.sum(d * d, keepdims=True)[:, 0:1]
                      * (1.0 / float(bsz * num_numerical)))


# --------------------------- JAX glue (no hot compute) -----------------------
def build_coef_table(beta):
    alpha = 1.0 - beta
    ca = np.cumprod(alpha)
    log_a = np.log(alpha)
    log_oma = np.log(1.0 - alpha)
    log_ca = np.log(ca)
    log_omca = np.log(1.0 - ca)
    tm1 = np.maximum(np.arange(len(beta)) - 1, 0)
    table = np.stack([np.sqrt(ca), np.sqrt(1.0 - ca),
                      log_ca, log_omca, log_a, log_oma,
                      log_ca[tm1], log_omca[tm1]], axis=1).astype(np.float32)   # (T, 8)
    consts = dict(lca_T=float(log_ca[-1]), lomca_T=float(log_omca[-1]))
    return jnp.asarray(table), consts


def init_denoise_params(key):
    k1, k2, k3, k4 = jax.random.split(key, 4)
    W1 = jax.random.normal(k1, (D_IN, HIDDEN), jnp.float32) * 0.1
    W2 = jax.random.normal(k2, (HIDDEN, D_IN), jnp.float32) * 0.1
    return dict(
        W1n=W1[:NUM_NUMERICAL], W1c=W1[NUM_NUMERICAL:],
        b1=jnp.zeros((1, HIDDEN), jnp.float32),
        W2n=W2[:, :NUM_NUMERICAL], W2c=W2[:, NUM_NUMERICAL:],
        b2n=jnp.zeros((1, NUM_NUMERICAL), jnp.float32),
        b2c=jnp.zeros((1, D_CAT), jnp.float32),
        Et=jax.random.normal(k3, (NUM_TIMESTEPS, HIDDEN), jnp.float32) * 0.1,
        Ey=jax.random.normal(k4, (NUM_Y, HIDDEN), jnp.float32) * 0.1,
    )


def tabddpm_forward(coef_table, consts, p, x_num_0, x_cat_0, y, key):
    kt, kn, ku = jax.random.split(key, 3)
    t = jax.random.randint(kt, (B, 1), 0, NUM_TIMESTEPS, dtype=jnp.int32)   # timesteps
    noise = jax.random.normal(kn, (B, NUM_NUMERICAL), jnp.float32)
    unif = jax.random.uniform(ku, (B, D_CAT), jnp.float32)                  # gumbel base

    kernel = functools.partial(
        fused_tabddpm_kernel, N_CAT, NUM_TIMESTEPS, NUM_NUMERICAL,
        consts['lca_T'], consts['lomca_T'])

    multi, gauss = pl.pallas_call(
        kernel,
        out_shape=(jax.ShapeDtypeStruct((1, 1), jnp.float32),
                   jax.ShapeDtypeStruct((1, 1), jnp.float32)),
        in_specs=[_VMEM] * 20,
        out_specs=(_VMEM, _VMEM),
    )(t, y.reshape(B, 1).astype(jnp.int32),
      x_num_0, x_cat_0.astype(jnp.int32), noise, unif,
      coef_table, NLOGK, MASK, MASK_T, LCLASS,
      p['W1n'], p['W1c'], p['b1'], p['W2n'], p['W2c'], p['b2n'], p['b2c'],
      p['Et'], p['Ey'])
    return multi[0, 0] + gauss[0, 0]


# ------------------------------------ main ------------------------------------
if __name__ == "__main__":
    beta = np.linspace(1e-4, 0.2, NUM_TIMESTEPS)
    coef_table, consts = build_coef_table(beta)
    mlp_params = init_denoise_params(jax.random.PRNGKey(42))

    key = jax.random.PRNGKey(0)
    kx, kc, ky, kf = jax.random.split(key, 4)
    x_num = jax.random.normal(kx, (B, NUM_NUMERICAL), jnp.float32)
    x_cat = jnp.stack(
        [jax.random.randint(jax.random.fold_in(kc, i), (B,), 0, int(NUM_CLASSES[i]))
         for i in range(N_CAT)], axis=1).astype(jnp.int32)      # (B, N_CAT) int32
    y = jax.random.randint(ky, (B,), 0, NUM_Y).astype(jnp.int32)

    loss = tabddpm_forward(coef_table, consts, mlp_params, x_num, x_cat, y, kf)
    jax.block_until_ready(loss)
    assert bool(jnp.isfinite(loss))
    print("KERNEL_OK")
</pallas_src>

<mosaic_0001>
module attributes {stable_mosaic.version = 11 : i64} {
  func.func @fused_tabddpm_kernel(%arg0: memref<8x1xi32, #tpu.memory_space<vmem>>, %arg1: memref<8x1xi32, #tpu.memory_space<vmem>>, %arg2: memref<8x3xf32, #tpu.memory_space<vmem>>, %arg3: memref<8x3xi32, #tpu.memory_space<vmem>>, %arg4: memref<8x3xf32, #tpu.memory_space<vmem>>, %arg5: memref<8x12xf32, #tpu.memory_space<vmem>>, %arg6: memref<10x8xf32, #tpu.memory_space<vmem>>, %arg7: memref<1x12xf32, #tpu.memory_space<vmem>>, %arg8: memref<3x12xf32, #tpu.memory_space<vmem>>, %arg9: memref<12x3xf32, #tpu.memory_space<vmem>>, %arg10: memref<1x12xi32, #tpu.memory_space<vmem>>, %arg11: memref<3x32xf32, #tpu.memory_space<vmem>>, %arg12: memref<12x32xf32, #tpu.memory_space<vmem>>, %arg13: memref<1x32xf32, #tpu.memory_space<vmem>>, %arg14: memref<32x3xf32, #tpu.memory_space<vmem>>, %arg15: memref<32x12xf32, #tpu.memory_space<vmem>>, %arg16: memref<1x3xf32, #tpu.memory_space<vmem>>, %arg17: memref<1x12xf32, #tpu.memory_space<vmem>>, %arg18: memref<10x32xf32, #tpu.memory_space<vmem>>, %arg19: memref<2x32xf32, #tpu.memory_space<vmem>>, %arg20: memref<1x1xf32, #tpu.memory_space<vmem>>, %arg21: memref<1x1xf32, #tpu.memory_space<vmem>>) attributes {dimension_semantics = [], scalar_prefetch = 0 : i64, scratch_operands = 0 : i64, tpu.core_type = #tpu.core_type<tc>} {
    %c0 = arith.constant 0 : index
    %c0_0 = arith.constant 0 : index
    %0 = vector.load %arg8[%c0, %c0_0] : memref<3x12xf32, #tpu.memory_space<vmem>>, vector<3x12xf32>
    %c0_1 = arith.constant 0 : index
    %c0_2 = arith.constant 0 : index
    %1 = vector.load %arg9[%c0_1, %c0_2] : memref<12x3xf32, #tpu.memory_space<vmem>>, vector<12x3xf32>
    %c0_3 = arith.constant 0 : index
    %c0_4 = arith.constant 0 : index
    %2 = vector.load %arg7[%c0_3, %c0_4] : memref<1x12xf32, #tpu.memory_space<vmem>>, vector<1x12xf32>
    %c0_5 = arith.constant 0 : index
    %c0_6 = arith.constant 0 : index
    %3 = vector.load %arg10[%c0_5, %c0_6] : memref<1x12xi32, #tpu.memory_space<vmem>>, vector<1x12xi32>
    %c0_7 = arith.constant 0 : index
    %c0_8 = arith.constant 0 : index
    %4 = vector.load %arg0[%c0_7, %c0_8] : memref<8x1xi32, #tpu.memory_space<vmem>>, vector<8x1xi32>
    %c0_9 = arith.constant 0 : index
    %c0_10 = arith.constant 0 : index
    %5 = vector.load %arg1[%c0_9, %c0_10] : memref<8x1xi32, #tpu.memory_space<vmem>>, vector<8x1xi32>
    %6 = tpu.iota {dimensions = array<i32: 1>} : vector<8x10xi32>
    %7 = vector.broadcast %4 : vector<8x1xi32> to vector<8x10xi32>
    %8 = arith.cmpi eq, %6, %7 : vector<8x10xi32>
    %9 = arith.extui %8 : vector<8x10xi1> to vector<8x10xi32>
    %10 = arith.sitofp %9 : vector<8x10xi32> to vector<8x10xf32>
    %11 = tpu.iota {dimensions = array<i32: 1>} : vector<8x2xi32>
    %12 = vector.broadcast %5 : vector<8x1xi32> to vector<8x2xi32>
    %13 = arith.cmpi eq, %11, %12 : vector<8x2xi32>
    %14 = arith.extui %13 : vector<8x2xi1> to vector<8x2xi32>
    %15 = arith.sitofp %14 : vector<8x2xi32> to vector<8x2xf32>
    %c0_11 = arith.constant 0 : index
    %c0_12 = arith.constant 0 : index
    %16 = vector.load %arg6[%c0_11, %c0_12] : memref<10x8xf32, #tpu.memory_space<vmem>>, vector<10x8xf32>
    %cst = arith.constant dense<0.000000e+00> : vector<8x8xf32>
    %17 = tpu.matmul %10, %16, %cst {dimension_numbers = #tpu.dot_dimension_numbers<[1], [0], [0], [1], [0, 0, 1, 1], [], []>} : vector<8x10xf32>, vector<10x8xf32>, vector<8x8xf32> -> vector<8x8xf32>
    %18 = vector.extract_strided_slice %17 {offsets = [0, 0], sizes = [8, 1], strides = [1, 1]} : vector<8x8xf32> to vector<8x1xf32>
    %19 = vector.extract_strided_slice %17 {offsets = [0, 1], sizes = [8, 1], strides = [1, 1]} : vector<8x8xf32> to vector<8x1xf32>
    %20 = vector.extract_strided_slice %17 {offsets = [0, 2], sizes = [8, 1], strides = [1, 1]} : vector<8x8xf32> to vector<8x1xf32>
    %21 = vector.extract_strided_slice %17 {offsets = [0, 3], sizes = [8, 1], strides = [1, 1]} : vector<8x8xf32> to vector<8x1xf32>
    %22 = vector.extract_strided_slice %17 {offsets = [0, 4], sizes = [8, 1], strides = [1, 1]} : vector<8x8xf32> to vector<8x1xf32>
    %23 = vector.extract_strided_slice %17 {offsets = [0, 5], sizes = [8, 1], strides = [1, 1]} : vector<8x8xf32> to vector<8x1xf32>
    %24 = vector.extract_strided_slice %17 {offsets = [0, 6], sizes = [8, 1], strides = [1, 1]} : vector<8x8xf32> to vector<8x1xf32>
    %25 = vector.extract_strided_slice %17 {offsets = [0, 7], sizes = [8, 1], strides = [1, 1]} : vector<8x8xf32> to vector<8x1xf32>
    %26 = vector.extract_strided_slice %10 {offsets = [0, 0], sizes = [8, 1], strides = [1, 1]} : vector<8x10xf32> to vector<8x1xf32>
    %c0_13 = arith.constant 0 : index
    %c0_14 = arith.constant 0 : index
    %27 = vector.load %arg2[%c0_13, %c0_14] : memref<8x3xf32, #tpu.memory_space<vmem>>, vector<8x3xf32>
    %c0_15 = arith.constant 0 : index
    %c0_16 = arith.constant 0 : index
    %28 = vector.load %arg4[%c0_15, %c0_16] : memref<8x3xf32, #tpu.memory_space<vmem>>, vector<8x3xf32>
    %29 = vector.broadcast %18 : vector<8x1xf32> to vector<8x3xf32>
    %30 = arith.mulf %29, %27 : vector<8x3xf32>
    %31 = vector.broadcast %19 : vector<8x1xf32> to vector<8x3xf32>
    %32 = arith.mulf %31, %28 : vector<8x3xf32>
    %33 = arith.addf %30, %32 : vector<8x3xf32>
    %c0_17 = arith.constant 0 : index
    %c0_18 = arith.constant 0 : index
    %34 = vector.load %arg3[%c0_17, %c0_18] : memref<8x3xi32, #tpu.memory_space<vmem>>, vector<8x3xi32>
    %cst_19 = arith.constant 0.000000e+00 : f32
    %35 = vector.broadcast %cst_19 : f32 to vector<8x12xf32>
    %36 = vector.extract_strided_slice %34 {offsets = [0, 0], sizes = [8, 1], strides = [1, 1]} : vector<8x3xi32> to vector<8x1xi32>
    %37 = vector.broadcast %36 : vector<8x1xi32> to vector<8x12xi32>
    %38 = vector.broadcast %3 : vector<1x12xi32> to vector<8x12xi32>
    %39 = arith.cmpi eq, %37, %38 : vector<8x12xi32>
    %40 = arith.extui %39 : vector<8x12xi1> to vector<8x12xi32>
    %41 = arith.sitofp %40 : vector<8x12xi32> to vector<8x12xf32>
    %42 = vector.extract_strided_slice %0 {offsets = [0, 0], sizes = [1, 12], strides = [1, 1]} : vector<3x12xf32> to vector<1x12xf32>
    %43 = vector.broadcast %42 : vector<1x12xf32> to vector<8x12xf32>
    %44 = arith.mulf %41, %43 : vector<8x12xf32>
    %45 = arith.addf %35, %44 : vector<8x12xf32>
    %46 = vector.extract_strided_slice %34 {offsets = [0, 1], sizes = [8, 1], strides = [1, 1]} : vector<8x3xi32> to vector<8x1xi32>
    %47 = vector.broadcast %46 : vector<8x1xi32> to vector<8x12xi32>
    %48 = vector.broadcast %3 : vector<1x12xi32> to vector<8x12xi32>
    %49 = arith.cmpi eq, %47, %48 : vector<8x12xi32>
    %50 = arith.extui %49 : vector<8x12xi1> to vector<8x12xi32>
    %51 = arith.sitofp %50 : vector<8x12xi32> to vector<8x12xf32>
    %52 = vector.extract_strided_slice %0 {offsets = [1, 0], sizes = [1, 12], strides = [1, 1]} : vector<3x12xf32> to vector<1x12xf32>
    %53 = vector.broadcast %52 : vector<1x12xf32> to vector<8x12xf32>
    %54 = arith.mulf %51, %53 : vector<8x12xf32>
    %55 = arith.addf %45, %54 : vector<8x12xf32>
    %56 = vector.extract_strided_slice %34 {offsets = [0, 2], sizes = [8, 1], strides = [1, 1]} : vector<8x3xi32> to vector<8x1xi32>
    %57 = vector.broadcast %56 : vector<8x1xi32> to vector<8x12xi32>
    %58 = vector.broadcast %3 : vector<1x12xi32> to vector<8x12xi32>
    %59 = arith.cmpi eq, %57, %58 : vector<8x12xi32>
    %60 = arith.extui %59 : vector<8x12xi1> to vector<8x12xi32>
    %61 = arith.sitofp %60 : vector<8x12xi32> to vector<8x12xf32>
    %62 = vector.extract_strided_slice %0 {offsets = [2, 0], sizes = [1, 12], strides = [1, 1]} : vector<3x12xf32> to vector<1x12xf32>
    %63 = vector.broadcast %62 : vector<1x12xf32> to vector<8x12xf32>
    %64 = arith.mulf %61, %63 : vector<8x12xf32>
    %65 = arith.addf %55, %64 : vector<8x12xf32>
    %cst_20 = arith.constant 1.000000e-30 : f32
    %66 = vector.broadcast %cst_20 : f32 to vector<8x12xf32>
    %67 = arith.maximumf %65, %66 : vector<8x12xf32>
    %68 = math.log %67 : vector<8x12xf32>
    %69 = vector.broadcast %20 : vector<8x1xf32> to vector<8x12xf32>
    %70 = arith.addf %68, %69 : vector<8x12xf32>
    %71 = vector.broadcast %21 : vector<8x1xf32> to vector<8x12xf32>
    %72 = vector.broadcast %2 : vector<1x12xf32> to vector<8x12xf32>
    %73 = arith.addf %71, %72 : vector<8x12xf32>
    %74 = arith.maximumf %70, %73 : vector<8x12xf32>
    %75 = arith.subf %70, %74 : vector<8x12xf32>
    %76 = math.exp %75 : vector<8x12xf32>
    %77 = arith.subf %73, %74 : vector<8x12xf32>
    %78 = math.exp %77 : vector<8x12xf32>
    %79 = arith.addf %76, %78 : vector<8x12xf32>
    %80 = math.log %79 : vector<8x12xf32>
    %81 = arith.addf %74, %80 : vector<8x12xf32>
    %c0_21 = arith.constant 0 : index
    %c0_22 = arith.constant 0 : index
    %82 = vector.load %arg5[%c0_21, %c0_22] : memref<8x12xf32, #tpu.memory_space<vmem>>, vector<8x12xf32>
    %cst_23 = arith.constant 1.000000e-30 : f32
    %83 = vector.broadcast %cst_23 : f32 to vector<8x12xf32>
    %84 = arith.addf %82, %83 : vector<8x12xf32>
    %85 = math.log %84 : vector<8x12xf32>
    %cst_24 = arith.constant 0.000000e+00 : f32
    %86 = vector.broadcast %cst_24 : f32 to vector<8x12xf32>
    %87 = arith.subf %86, %85 : vector<8x12xf32>
    %cst_25 = arith.constant 1.000000e-30 : f32
    %88 = vector.broadcast %cst_25 : f32 to vector<8x12xf32>
    %89 = arith.addf %87, %88 : vector<8x12xf32>
    %90 = math.log %89 : vector<8x12xf32>
    %cst_26 = arith.constant 0.000000e+00 : f32
    %91 = vector.broadcast %cst_26 : f32 to vector<8x12xf32>
    %92 = arith.subf %91, %90 : vector<8x12xf32>
    %93 = arith.addf %92, %81 : vector<8x12xf32>
    %cst_27 = arith.constant 0.000000e+00 : f32
    %94 = vector.broadcast %cst_27 : f32 to vector<8x12xf32>
    %95 = vector.extract_strided_slice %0 {offsets = [0, 0], sizes = [1, 12], strides = [1, 1]} : vector<3x12xf32> to vector<1x12xf32>
    %cst_28 = arith.constant 0.000000e+00 : f32
    %96 = vector.broadcast %cst_28 : f32 to vector<1x12xf32>
    %97 = arith.cmpf ogt, %95, %96 : vector<1x12xf32>
    %cst_29 = arith.constant -1.000000e+30 : f32
    %98 = vector.shape_cast %97 : vector<1x12xi1> to vector<1x12xi1>
    %99 = vector.broadcast %98 : vector<1x12xi1> to vector<8x12xi1>
    %100 = vector.broadcast %cst_29 : f32 to vector<8x12xf32>
    %101 = arith.select %99, %93, %100 : vector<8x12xi1>, vector<8x12xf32>
    %cst_30 = arith.constant dense<0xFF800000> : vector<8xf32>
    %102 = vector.multi_reduction <maximumf>, %101, %cst_30 [1] : vector<8x12xf32> to vector<8xf32>
    %103 = vector.shape_cast %102 : vector<8xf32> to vector<8x1xf32>
    %104 = vector.broadcast %103 : vector<8x1xf32> to vector<8x12xf32>
    %105 = vector.broadcast %95 : vector<1x12xf32> to vector<8x12xf32>
    %106 = arith.mulf %104, %105 : vector<8x12xf32>
    %107 = arith.addf %94, %106 : vector<8x12xf32>
    %108 = vector.extract_strided_slice %0 {offsets = [1, 0], sizes = [1, 12], strides = [1, 1]} : vector<3x12xf32> to vector<1x12xf32>
    %cst_31 = arith.constant 0.000000e+00 : f32
    %109 = vector.broadcast %cst_31 : f32 to vector<1x12xf32>
    %110 = arith.cmpf ogt, %108, %109 : vector<1x12xf32>
    %cst_32 = arith.constant -1.000000e+30 : f32
    %111 = vector.shape_cast %110 : vector<1x12xi1> to vector<1x12xi1>
    %112 = vector.broadcast %111 : vector<1x12xi1> to vector<8x12xi1>
    %113 = vector.broadcast %cst_32 : f32 to vector<8x12xf32>
    %114 = arith.select %112, %93, %113 : vector<8x12xi1>, vector<8x12xf32>
    %cst_33 = arith.constant dense<0xFF800000> : vector<8xf32>
    %115 = vector.multi_reduction <maximumf>, %114, %cst_33 [1] : vector<8x12xf32> to vector<8xf32>
    %116 = vector.shape_cast %115 : vector<8xf32> to vector<8x1xf32>
    %117 = vector.broadcast %116 : vector<8x1xf32> to vector<8x12xf32>
    %118 = vector.broadcast %108 : vector<1x12xf32> to vector<8x12xf32>
    %119 = arith.mulf %117, %118 : vector<8x12xf32>
    %120 = arith.addf %107, %119 : vector<8x12xf32>
    %121 = vector.extract_strided_slice %0 {offsets = [2, 0], sizes = [1, 12], strides = [1, 1]} : vector<3x12xf32> to vector<1x12xf32>
    %cst_34 = arith.constant 0.000000e+00 : f32
    %122 = vector.broadcast %cst_34 : f32 to vector<1x12xf32>
    %123 = arith.cmpf ogt, %121, %122 : vector<1x12xf32>
    %cst_35 = arith.constant -1.000000e+30 : f32
    %124 = vector.shape_cast %123 : vector<1x12xi1> to vector<1x12xi1>
    %125 = vector.broadcast %124 : vector<1x12xi1> to vector<8x12xi1>
    %126 = vector.broadcast %cst_35 : f32 to vector<8x12xf32>
    %127 = arith.select %125, %93, %126 : vector<8x12xi1>, vector<8x12xf32>
    %cst_36 = arith.constant dense<0xFF800000> : vector<8xf32>
    %128 = vector.multi_reduction <maximumf>, %127, %cst_36 [1] : vector<8x12xf32> to vector<8xf32>
    %129 = vector.shape_cast %128 : vector<8xf32> to vector<8x1xf32>
    %130 = vector.broadcast %129 : vector<8x1xf32> to vector<8x12xf32>
    %131 = vector.broadcast %121 : vector<1x12xf32> to vector<8x12xf32>
    %132 = arith.mulf %130, %131 : vector<8x12xf32>
    %133 = arith.addf %120, %132 : vector<8x12xf32>
    %134 = arith.cmpf oeq, %93, %133 : vector<8x12xf32>
    %135 = arith.extui %134 : vector<8x12xi1> to vector<8x12xi32>
    %136 = arith.sitofp %135 : vector<8x12xi32> to vector<8x12xf32>
    %cst_37 = arith.constant 1.000000e-30 : f32
    %137 = vector.broadcast %cst_37 : f32 to vector<8x12xf32>
    %138 = arith.maximumf %136, %137 : vector<8x12xf32>
    %139 = math.log %138 : vector<8x12xf32>
    %c0_38 = arith.constant 0 : index
    %c0_39 = arith.constant 0 : index
    %140 = vector.load %arg18[%c0_38, %c0_39] : memref<10x32xf32, #tpu.memory_space<vmem>>, vector<10x32xf32>
    %cst_40 = arith.constant dense<0.000000e+00> : vector<8x32xf32>
    %141 = tpu.matmul %10, %140, %cst_40 {dimension_numbers = #tpu.dot_dimension_numbers<[1], [0], [0], [1], [0, 0, 1, 1], [], []>} : vector<8x10xf32>, vector<10x32xf32>, vector<8x32xf32> -> vector<8x32xf32>
    %c0_41 = arith.constant 0 : index
    %c0_42 = arith.constant 0 : index
    %142 = vector.load %arg19[%c0_41, %c0_42] : memref<2x32xf32, #tpu.memory_space<vmem>>, vector<2x32xf32>
    %cst_43 = arith.constant dense<0.000000e+00> : vector<8x32xf32>
    %143 = tpu.matmul %15, %142, %cst_43 {dimension_numbers = #tpu.dot_dimension_numbers<[1], [0], [0], [1], [0, 0, 1, 1], [], []>} : vector<8x2xf32>, vector<2x32xf32>, vector<8x32xf32> -> vector<8x32xf32>
    %c0_44 = arith.constant 0 : index
    %c0_45 = arith.constant 0 : index
    %144 = vector.load %arg11[%c0_44, %c0_45] : memref<3x32xf32, #tpu.memory_space<vmem>>, vector<3x32xf32>
    %cst_46 = arith.constant dense<0.000000e+00> : vector<8x32xf32>
    %145 = tpu.matmul %33, %144, %cst_46 {dimension_numbers = #tpu.dot_dimension_numbers<[1], [0], [0], [1], [0, 0, 1, 1], [], []>} : vector<8x3xf32>, vector<3x32xf32>, vector<8x32xf32> -> vector<8x32xf32>
    %c0_47 = arith.constant 0 : index
    %c0_48 = arith.constant 0 : index
    %146 = vector.load %arg12[%c0_47, %c0_48] : memref<12x32xf32, #tpu.memory_space<vmem>>, vector<12x32xf32>
    %cst_49 = arith.constant dense<0.000000e+00> : vector<8x32xf32>
    %147 = tpu.matmul %139, %146, %cst_49 {dimension_numbers = #tpu.dot_dimension_numbers<[1], [0], [0], [1], [0, 0, 1, 1], [], []>} : vector<8x12xf32>, vector<12x32xf32>, vector<8x32xf32> -> vector<8x32xf32>
    %148 = arith.addf %145, %147 : vector<8x32xf32>
    %c0_50 = arith.constant 0 : index
    %c0_51 = arith.constant 0 : index
    %149 = vector.load %arg13[%c0_50, %c0_51] : memref<1x32xf32, #tpu.memory_space<vmem>>, vector<1x32xf32>
    %150 = vector.broadcast %149 : vector<1x32xf32> to vector<8x32xf32>
    %151 = arith.addf %148, %150 : vector<8x32xf32>
    %152 = arith.addf %151, %141 : vector<8x32xf32>
    %153 = arith.addf %152, %143 : vector<8x32xf32>
    %cst_52 = arith.constant 0.000000e+00 : f32
    %154 = vector.broadcast %cst_52 : f32 to vector<8x32xf32>
    %155 = arith.maximumf %153, %154 : vector<8x32xf32>
    %c0_53 = arith.constant 0 : index
    %c0_54 = arith.constant 0 : index
    %156 = vector.load %arg14[%c0_53, %c0_54] : memref<32x3xf32, #tpu.memory_space<vmem>>, vector<32x3xf32>
    %cst_55 = arith.constant dense<0.000000e+00> : vector<8x3xf32>
    %157 = tpu.matmul %155, %156, %cst_55 {dimension_numbers = #tpu.dot_dimension_numbers<[1], [0], [0], [1], [0, 0, 1, 1], [], []>} : vector<8x32xf32>, vector<32x3xf32>, vector<8x3xf32> -> vector<8x3xf32>
    %c0_56 = arith.constant 0 : index
    %c0_57 = arith.constant 0 : index
    %158 = vector.load %arg16[%c0_56, %c0_57] : memref<1x3xf32, #tpu.memory_space<vmem>>, vector<1x3xf32>
    %159 = vector.broadcast %158 : vector<1x3xf32> to vector<8x3xf32>
    %160 = arith.addf %157, %159 : vector<8x3xf32>
    %c0_58 = arith.constant 0 : index
    %c0_59 = arith.constant 0 : index
    %161 = vector.load %arg15[%c0_58, %c0_59] : memref<32x12xf32, #tpu.memory_space<vmem>>, vector<32x12xf32>
    %cst_60 = arith.constant dense<0.000000e+00> : vector<8x12xf32>
    %162 = tpu.matmul %155, %161, %cst_60 {dimension_numbers = #tpu.dot_dimension_numbers<[1], [0], [0], [1], [0, 0, 1, 1], [], []>} : vector<8x32xf32>, vector<32x12xf32>, vector<8x12xf32> -> vector<8x12xf32>
    %c0_61 = arith.constant 0 : index
    %c0_62 = arith.constant 0 : index
    %163 = vector.load %arg17[%c0_61, %c0_62] : memref<1x12xf32, #tpu.memory_space<vmem>>, vector<1x12xf32>
    %164 = vector.broadcast %163 : vector<1x12xf32> to vector<8x12xf32>
    %165 = arith.addf %162, %164 : vector<8x12xf32>
    %cst_63 = arith.constant 0.000000e+00 : f32
    %166 = vector.broadcast %cst_63 : f32 to vector<8x12xf32>
    %167 = vector.extract_strided_slice %0 {offsets = [0, 0], sizes = [1, 12], strides = [1, 1]} : vector<3x12xf32> to vector<1x12xf32>
    %cst_64 = arith.constant 0.000000e+00 : f32
    %168 = vector.broadcast %cst_64 : f32 to vector<1x12xf32>
    %169 = arith.cmpf ogt, %167, %168 : vector<1x12xf32>
    %cst_65 = arith.constant -1.000000e+30 : f32
    %170 = vector.shape_cast %169 : vector<1x12xi1> to vector<1x12xi1>
    %171 = vector.broadcast %170 : vector<1x12xi1> to vector<8x12xi1>
    %172 = vector.broadcast %cst_65 : f32 to vector<8x12xf32>
    %173 = arith.select %171, %165, %172 : vector<8x12xi1>, vector<8x12xf32>
    %cst_66 = arith.constant dense<0xFF800000> : vector<8xf32>
    %174 = vector.multi_reduction <maximumf>, %173, %cst_66 [1] : vector<8x12xf32> to vector<8xf32>
    %175 = vector.shape_cast %174 : vector<8xf32> to vector<8x1xf32>
    %176 = vector.broadcast %175 : vector<8x1xf32> to vector<8x12xf32>
    %177 = vector.broadcast %167 : vector<1x12xf32> to vector<8x12xf32>
    %178 = arith.mulf %176, %177 : vector<8x12xf32>
    %179 = arith.addf %166, %178 : vector<8x12xf32>
    %180 = vector.extract_strided_slice %0 {offsets = [1, 0], sizes = [1, 12], strides = [1, 1]} : vector<3x12xf32> to vector<1x12xf32>
    %cst_67 = arith.constant 0.000000e+00 : f32
    %181 = vector.broadcast %cst_67 : f32 to vector<1x12xf32>
    %182 = arith.cmpf ogt, %180, %181 : vector<1x12xf32>
    %cst_68 = arith.constant -1.000000e+30 : f32
    %183 = vector.shape_cast %182 : vector<1x12xi1> to vector<1x12xi1>
    %184 = vector.broadcast %183 : vector<1x12xi1> to vector<8x12xi1>
    %185 = vector.broadcast %cst_68 : f32 to vector<8x12xf32>
    %186 = arith.select %184, %165, %185 : vector<8x12xi1>, vector<8x12xf32>
    %cst_69 = arith.constant dense<0xFF800000> : vector<8xf32>
    %187 = vector.multi_reduction <maximumf>, %186, %cst_69 [1] : vector<8x12xf32> to vector<8xf32>
    %188 = vector.shape_cast %187 : vector<8xf32> to vector<8x1xf32>
    %189 = vector.broadcast %188 : vector<8x1xf32> to vector<8x12xf32>
    %190 = vector.broadcast %180 : vector<1x12xf32> to vector<8x12xf32>
    %191 = arith.mulf %189, %190 : vector<8x12xf32>
    %192 = arith.addf %179, %191 : vector<8x12xf32>
    %193 = vector.extract_strided_slice %0 {offsets = [2, 0], sizes = [1, 12], strides = [1, 1]} : vector<3x12xf32> to vector<1x12xf32>
    %cst_70 = arith.constant 0.000000e+00 : f32
    %194 = vector.broadcast %cst_70 : f32 to vector<1x12xf32>
    %195 = arith.cmpf ogt, %193, %194 : vector<1x12xf32>
    %cst_71 = arith.constant -1.000000e+30 : f32
    %196 = vector.shape_cast %195 : vector<1x12xi1> to vector<1x12xi1>
    %197 = vector.broadcast %196 : vector<1x12xi1> to vector<8x12xi1>
    %198 = vector.broadcast %cst_71 : f32 to vector<8x12xf32>
    %199 = arith.select %197, %165, %198 : vector<8x12xi1>, vector<8x12xf32>
    %cst_72 = arith.constant dense<0xFF800000> : vector<8xf32>
    %200 = vector.multi_reduction <maximumf>, %199, %cst_72 [1] : vector<8x12xf32> to vector<8xf32>
    %201 = vector.shape_cast %200 : vector<8xf32> to vector<8x1xf32>
    %202 = vector.broadcast %201 : vector<8x1xf32> to vector<8x12xf32>
    %203 = vector.broadcast %193 : vector<1x12xf32> to vector<8x12xf32>
    %204 = arith.mulf %202, %203 : vector<8x12xf32>
    %205 = arith.addf %192, %204 : vector<8x12xf32>
    %206 = arith.subf %165, %205 : vector<8x12xf32>
    %207 = math.exp %206 : vector<8x12xf32>
    %cst_73 = arith.constant dense<0.000000e+00> : vector<8x3xf32>
    %208 = tpu.matmul %207, %1, %cst_73 {dimension_numbers = #tpu.dot_dimension_numbers<[1], [0], [0], [1], [0, 0, 1, 1], [], []>} : vector<8x12xf32>, vector<12x3xf32>, vector<8x3xf32> -> vector<8x3xf32>
    %cst_74 = arith.constant dense<0.000000e+00> : vector<8x12xf32>
    %209 = tpu.matmul %208, %0, %cst_74 {dimension_numbers = #tpu.dot_dimension_numbers<[1], [0], [0], [1], [0, 0, 1, 1], [], []>} : vector<8x3xf32>, vector<3x12xf32>, vector<8x12xf32> -> vector<8x12xf32>
    %210 = math.log %209 : vector<8x12xf32>
    %211 = arith.addf %205, %210 : vector<8x12xf32>
    %212 = arith.subf %165, %211 : vector<8x12xf32>
    %213 = vector.broadcast %22 : vector<8x1xf32> to vector<8x12xf32>
    %214 = arith.addf %139, %213 : vector<8x12xf32>
    %215 = vector.broadcast %23 : vector<8x1xf32> to vector<8x12xf32>
    %216 = vector.broadcast %2 : vector<1x12xf32> to vector<8x12xf32>
    %217 = arith.addf %215, %216 : vector<8x12xf32>
    %218 = arith.maximumf %214, %217 : vector<8x12xf32>
    %219 = arith.subf %214, %218 : vector<8x12xf32>
    %220 = math.exp %219 : vector<8x12xf32>
    %221 = arith.subf %217, %218 : vector<8x12xf32>
    %222 = math.exp %221 : vector<8x12xf32>
    %223 = arith.addf %220, %222 : vector<8x12xf32>
    %224 = math.log %223 : vector<8x12xf32>
    %225 = arith.addf %218, %224 : vector<8x12xf32>
    %226 = vector.broadcast %24 : vector<8x1xf32> to vector<8x12xf32>
    %227 = arith.addf %68, %226 : vector<8x12xf32>
    %228 = vector.broadcast %25 : vector<8x1xf32> to vector<8x12xf32>
    %229 = vector.broadcast %2 : vector<1x12xf32> to vector<8x12xf32>
    %230 = arith.addf %228, %229 : vector<8x12xf32>
    %231 = arith.maximumf %227, %230 : vector<8x12xf32>
    %232 = arith.subf %227, %231 : vector<8x12xf32>
    %233 = math.exp %232 : vector<8x12xf32>
    %234 = arith.subf %230, %231 : vector<8x12xf32>
    %235 = math.exp %234 : vector<8x12xf32>
    %236 = arith.addf %233, %235 : vector<8x12xf32>
    %237 = math.log %236 : vector<8x12xf32>
    %238 = arith.addf %231, %237 : vector<8x12xf32>
    %239 = vector.broadcast %26 : vector<8x1xf32> to vector<8x12xf32>
    %240 = arith.mulf %239, %68 : vector<8x12xf32>
    %cst_75 = arith.constant 1.000000e+00 : f32
    %241 = vector.broadcast %cst_75 : f32 to vector<8x1xf32>
    %242 = arith.subf %241, %26 : vector<8x1xf32>
    %243 = vector.broadcast %242 : vector<8x1xf32> to vector<8x12xf32>
    %244 = arith.mulf %243, %238 : vector<8x12xf32>
    %245 = arith.addf %240, %244 : vector<8x12xf32>
    %246 = arith.addf %245, %225 : vector<8x12xf32>
    %cst_76 = arith.constant 0.000000e+00 : f32
    %247 = vector.broadcast %cst_76 : f32 to vector<8x12xf32>
    %248 = vector.extract_strided_slice %0 {offsets = [0, 0], sizes = [1, 12], strides = [1, 1]} : vector<3x12xf32> to vector<1x12xf32>
    %cst_77 = arith.constant 0.000000e+00 : f32
    %249 = vector.broadcast %cst_77 : f32 to vector<1x12xf32>
    %250 = arith.cmpf ogt, %248, %249 : vector<1x12xf32>
    %cst_78 = arith.constant -1.000000e+30 : f32
    %251 = vector.shape_cast %250 : vector<1x12xi1> to vector<1x12xi1>
    %252 = vector.broadcast %251 : vector<1x12xi1> to vector<8x12xi1>
    %253 = vector.broadcast %cst_78 : f32 to vector<8x12xf32>
    %254 = arith.select %252, %246, %253 : vector<8x12xi1>, vector<8x12xf32>
    %cst_79 = arith.constant dense<0xFF800000> : vector<8xf32>
    %255 = vector.multi_reduction <maximumf>, %254, %cst_79 [1] : vector<8x12xf32> to vector<8xf32>
    %256 = vector.shape_cast %255 : vector<8xf32> to vector<8x1xf32>
    %257 = vector.broadcast %256 : vector<8x1xf32> to vector<8x12xf32>
    %258 = vector.broadcast %248 : vector<1x12xf32> to vector<8x12xf32>
    %259 = arith.mulf %257, %258 : vector<8x12xf32>
    %260 = arith.addf %247, %259 : vector<8x12xf32>
    %261 = vector.extract_strided_slice %0 {offsets = [1, 0], sizes = [1, 12], strides = [1, 1]} : vector<3x12xf32> to vector<1x12xf32>
    %cst_80 = arith.constant 0.000000e+00 : f32
    %262 = vector.broadcast %cst_80 : f32 to vector<1x12xf32>
    %263 = arith.cmpf ogt, %261, %262 : vector<1x12xf32>
    %cst_81 = arith.constant -1.000000e+30 : f32
    %264 = vector.shape_cast %263 : vector<1x12xi1> to vector<1x12xi1>
    %265 = vector.broadcast %264 : vector<1x12xi1> to vector<8x12xi1>
    %266 = vector.broadcast %cst_81 : f32 to vector<8x12xf32>
    %267 = arith.select %265, %246, %266 : vector<8x12xi1>, vector<8x12xf32>
    %cst_82 = arith.constant dense<0xFF800000> : vector<8xf32>
    %268 = vector.multi_reduction <maximumf>, %267, %cst_82 [1] : vector<8x12xf32> to vector<8xf32>
    %269 = vector.shape_cast %268 : vector<8xf32> to vector<8x1xf32>
    %270 = vector.broadcast %269 : vector<8x1xf32> to vector<8x12xf32>
    %271 = vector.broadcast %261 : vector<1x12xf32> to vector<8x12xf32>
    %272 = arith.mulf %270, %271 : vector<8x12xf32>
    %273 = arith.addf %260, %272 : vector<8x12xf32>
    %274 = vector.extract_strided_slice %0 {offsets = [2, 0], sizes = [1, 12], strides = [1, 1]} : vector<3x12xf32> to vector<1x12xf32>
    %cst_83 = arith.constant 0.000000e+00 : f32
    %275 = vector.broadcast %cst_83 : f32 to vector<1x12xf32>
    %276 = arith.cmpf ogt, %274, %275 : vector<1x12xf32>
    %cst_84 = arith.constant -1.000000e+30 : f32
    %277 = vector.shape_cast %276 : vector<1x12xi1> to vector<1x12xi1>
    %278 = vector.broadcast %277 : vector<1x12xi1> to vector<8x12xi1>
    %279 = vector.broadcast %cst_84 : f32 to vector<8x12xf32>
    %280 = arith.select %278, %246, %279 : vector<8x12xi1>, vector<8x12xf32>
    %cst_85 = arith.constant dense<0xFF800000> : vector<8xf32>
    %281 = vector.multi_reduction <maximumf>, %280, %cst_85 [1] : vector<8x12xf32> to vector<8xf32>
    %282 = vector.shape_cast %281 : vector<8xf32> to vector<8x1xf32>
    %283 = vector.broadcast %282 : vector<8x1xf32> to vector<8x12xf32>
    %284 = vector.broadcast %274 : vector<1x12xf32> to vector<8x12xf32>
    %285 = arith.mulf %283, %284 : vector<8x12xf32>
    %286 = arith.addf %273, %285 : vector<8x12xf32>
    %287 = arith.subf %246, %286 : vector<8x12xf32>
    %288 = math.exp %287 : vector<8x12xf32>
    %cst_86 = arith.constant dense<0.000000e+00> : vector<8x3xf32>
    %289 = tpu.matmul %288, %1, %cst_86 {dimension_numbers = #tpu.dot_dimension_numbers<[1], [0], [0], [1], [0, 0, 1, 1], [], []>} : vector<8x12xf32>, vector<12x3xf32>, vector<8x3xf32> -> vector<8x3xf32>
    %cst_87 = arith.constant dense<0.000000e+00> : vector<8x12xf32>
    %290 = tpu.matmul %289, %0, %cst_87 {dimension_numbers = #tpu.dot_dimension_numbers<[1], [0], [0], [1], [0, 0, 1, 1], [], []>} : vector<8x3xf32>, vector<3x12xf32>, vector<8x12xf32> -> vector<8x12xf32>
    %291 = math.log %290 : vector<8x12xf32>
    %292 = arith.addf %286, %291 : vector<8x12xf32>
    %293 = arith.subf %246, %292 : vector<8x12xf32>
    %294 = vector.broadcast %24 : vector<8x1xf32> to vector<8x12xf32>
    %295 = arith.addf %212, %294 : vector<8x12xf32>
    %296 = vector.broadcast %25 : vector<8x1xf32> to vector<8x12xf32>
    %297 = vector.broadcast %2 : vector<1x12xf32> to vector<8x12xf32>
    %298 = arith.addf %296, %297 : vector<8x12xf32>
    %299 = arith.maximumf %295, %298 : vector<8x12xf32>
    %300 = arith.subf %295, %299 : vector<8x12xf32>
    %301 = math.exp %300 : vector<8x12xf32>
    %302 = arith.subf %298, %299 : vector<8x12xf32>
    %303 = math.exp %302 : vector<8x12xf32>
    %304 = arith.addf %301, %303 : vector<8x12xf32>
    %305 = math.log %304 : vector<8x12xf32>
    %306 = arith.addf %299, %305 : vector<8x12xf32>
    %307 = vector.broadcast %26 : vector<8x1xf32> to vector<8x12xf32>
    %308 = arith.mulf %307, %212 : vector<8x12xf32>
    %cst_88 = arith.constant 1.000000e+00 : f32
    %309 = vector.broadcast %cst_88 : f32 to vector<8x1xf32>
    %310 = arith.subf %309, %26 : vector<8x1xf32>
    %311 = vector.broadcast %310 : vector<8x1xf32> to vector<8x12xf32>
    %312 = arith.mulf %311, %306 : vector<8x12xf32>
    %313 = arith.addf %308, %312 : vector<8x12xf32>
    %314 = arith.addf %313, %225 : vector<8x12xf32>
    %cst_89 = arith.constant 0.000000e+00 : f32
    %315 = vector.broadcast %cst_89 : f32 to vector<8x12xf32>
    %316 = vector.extract_strided_slice %0 {offsets = [0, 0], sizes = [1, 12], strides = [1, 1]} : vector<3x12xf32> to vector<1x12xf32>
    %cst_90 = arith.constant 0.000000e+00 : f32
    %317 = vector.broadcast %cst_90 : f32 to vector<1x12xf32>
    %318 = arith.cmpf ogt, %316, %317 : vector<1x12xf32>
    %cst_91 = arith.constant -1.000000e+30 : f32
    %319 = vector.shape_cast %318 : vector<1x12xi1> to vector<1x12xi1>
    %320 = vector.broadcast %319 : vector<1x12xi1> to vector<8x12xi1>
    %321 = vector.broadcast %cst_91 : f32 to vector<8x12xf32>
    %322 = arith.select %320, %314, %321 : vector<8x12xi1>, vector<8x12xf32>
    %cst_92 = arith.constant dense<0xFF800000> : vector<8xf32>
    %323 = vector.multi_reduction <maximumf>, %322, %cst_92 [1] : vector<8x12xf32> to vector<8xf32>
    %324 = vector.shape_cast %323 : vector<8xf32> to vector<8x1xf32>
    %325 = vector.broadcast %324 : vector<8x1xf32> to vector<8x12xf32>
    %326 = vector.broadcast %316 : vector<1x12xf32> to vector<8x12xf32>
    %327 = arith.mulf %325, %326 : vector<8x12xf32>
    %328 = arith.addf %315, %327 : vector<8x12xf32>
    %329 = vector.extract_strided_slice %0 {offsets = [1, 0], sizes = [1, 12], strides = [1, 1]} : vector<3x12xf32> to vector<1x12xf32>
    %cst_93 = arith.constant 0.000000e+00 : f32
    %330 = vector.broadcast %cst_93 : f32 to vector<1x12xf32>
    %331 = arith.cmpf ogt, %329, %330 : vector<1x12xf32>
    %cst_94 = arith.constant -1.000000e+30 : f32
    %332 = vector.shape_cast %331 : vector<1x12xi1> to vector<1x12xi1>
    %333 = vector.broadcast %332 : vector<1x12xi1> to vector<8x12xi1>
    %334 = vector.broadcast %cst_94 : f32 to vector<8x12xf32>
    %335 = arith.select %333, %314, %334 : vector<8x12xi1>, vector<8x12xf32>
    %cst_95 = arith.constant dense<0xFF800000> : vector<8xf32>
    %336 = vector.multi_reduction <maximumf>, %335, %cst_95 [1] : vector<8x12xf32> to vector<8xf32>
    %337 = vector.shape_cast %336 : vector<8xf32> to vector<8x1xf32>
    %338 = vector.broadcast %337 : vector<8x1xf32> to vector<8x12xf32>
    %339 = vector.broadcast %329 : vector<1x12xf32> to vector<8x12xf32>
    %340 = arith.mulf %338, %339 : vector<8x12xf32>
    %341 = arith.addf %328, %340 : vector<8x12xf32>
    %342 = vector.extract_strided_slice %0 {offsets = [2, 0], sizes = [1, 12], strides = [1, 1]} : vector<3x12xf32> to vector<1x12xf32>
    %cst_96 = arith.constant 0.000000e+00 : f32
    %343 = vector.broadcast %cst_96 : f32 to vector<1x12xf32>
    %344 = arith.cmpf ogt, %342, %343 : vector<1x12xf32>
    %cst_97 = arith.constant -1.000000e+30 : f32
    %345 = vector.shape_cast %344 : vector<1x12xi1> to vector<1x12xi1>
    %346 = vector.broadcast %345 : vector<1x12xi1> to vector<8x12xi1>
    %347 = vector.broadcast %cst_97 : f32 to vector<8x12xf32>
    %348 = arith.select %346, %314, %347 : vector<8x12xi1>, vector<8x12xf32>
    %cst_98 = arith.constant dense<0xFF800000> : vector<8xf32>
    %349 = vector.multi_reduction <maximumf>, %348, %cst_98 [1] : vector<8x12xf32> to vector<8xf32>
    %350 = vector.shape_cast %349 : vector<8xf32> to vector<8x1xf32>
    %351 = vector.broadcast %350 : vector<8x1xf32> to vector<8x12xf32>
    %352 = vector.broadcast %342 : vector<1x12xf32> to vector<8x12xf32>
    %353 = arith.mulf %351, %352 : vector<8x12xf32>
    %354 = arith.addf %341, %353 : vector<8x12xf32>
    %355 = arith.subf %314, %354 : vector<8x12xf32>
    %356 = math.exp %355 : vector<8x12xf32>
    %cst_99 = arith.constant dense<0.000000e+00> : vector<8x3xf32>
    %357 = tpu.matmul %356, %1, %cst_99 {dimension_numbers = #tpu.dot_dimension_numbers<[1], [0], [0], [1], [0, 0, 1, 1], [], []>} : vector<8x12xf32>, vector<12x3xf32>, vector<8x3xf32> -> vector<8x3xf32>
    %cst_100 = arith.constant dense<0.000000e+00> : vector<8x12xf32>
    %358 = tpu.matmul %357, %0, %cst_100 {dimension_numbers = #tpu.dot_dimension_numbers<[1], [0], [0], [1], [0, 0, 1, 1], [], []>} : vector<8x3xf32>, vector<3x12xf32>, vector<8x12xf32> -> vector<8x12xf32>
    %359 = math.log %358 : vector<8x12xf32>
    %360 = arith.addf %354, %359 : vector<8x12xf32>
    %361 = arith.subf %314, %360 : vector<8x12xf32>
    %362 = math.exp %293 : vector<8x12xf32>
    %363 = arith.subf %293, %361 : vector<8x12xf32>
    %364 = arith.mulf %362, %363 : vector<8x12xf32>
    %cst_101 = arith.constant dense<0.000000e+00> : vector<8xf32>
    %365 = vector.multi_reduction <add>, %364, %cst_101 [1] : vector<8x12xf32> to vector<8xf32>
    %366 = vector.shape_cast %365 : vector<8xf32> to vector<8x1xf32>
    %367 = math.exp %68 : vector<8x12xf32>
    %368 = arith.mulf %367, %361 : vector<8x12xf32>
    %cst_102 = arith.constant dense<0.000000e+00> : vector<8xf32>
    %369 = vector.multi_reduction <add>, %368, %cst_102 [1] : vector<8x12xf32> to vector<8xf32>
    %370 = vector.shape_cast %369 : vector<8xf32> to vector<8x1xf32>
    %cst_103 = arith.constant 0.000000e+00 : f32
    %371 = vector.broadcast %cst_103 : f32 to vector<8x1xf32>
    %372 = arith.subf %371, %370 : vector<8x1xf32>
    %cst_104 = arith.constant -1.07939982 : f32
    %373 = vector.broadcast %cst_104 : f32 to vector<8x12xf32>
    %374 = arith.addf %68, %373 : vector<8x12xf32>
    %cst_105 = arith.constant -0.415211529 : f32
    %375 = vector.broadcast %cst_105 : f32 to vector<1x12xf32>
    %376 = arith.addf %375, %2 : vector<1x12xf32>
    %377 = vector.broadcast %376 : vector<1x12xf32> to vector<8x12xf32>
    %378 = arith.maximumf %374, %377 : vector<8x12xf32>
    %379 = arith.subf %374, %378 : vector<8x12xf32>
    %380 = math.exp %379 : vector<8x12xf32>
    %381 = vector.broadcast %376 : vector<1x12xf32> to vector<8x12xf32>
    %382 = arith.subf %381, %378 : vector<8x12xf32>
    %383 = math.exp %382 : vector<8x12xf32>
    %384 = arith.addf %380, %383 : vector<8x12xf32>
    %385 = math.log %384 : vector<8x12xf32>
    %386 = arith.addf %378, %385 : vector<8x12xf32>
    %387 = math.exp %386 : vector<8x12xf32>
    %388 = vector.broadcast %2 : vector<1x12xf32> to vector<8x12xf32>
    %389 = arith.subf %386, %388 : vector<8x12xf32>
    %390 = arith.mulf %387, %389 : vector<8x12xf32>
    %cst_106 = arith.constant dense<0.000000e+00> : vector<8xf32>
    %391 = vector.multi_reduction <add>, %390, %cst_106 [1] : vector<8x12xf32> to vector<8xf32>
    %392 = vector.shape_cast %391 : vector<8xf32> to vector<8x1xf32>
    %393 = arith.mulf %26, %372 : vector<8x1xf32>
    %cst_107 = arith.constant 1.000000e+00 : f32
    %394 = vector.broadcast %cst_107 : f32 to vector<8x1xf32>
    %395 = arith.subf %394, %26 : vector<8x1xf32>
    %396 = arith.mulf %395, %366 : vector<8x1xf32>
    %397 = arith.addf %393, %396 : vector<8x1xf32>
    %cst_108 = arith.constant 1.000000e+01 : f32
    %398 = vector.broadcast %cst_108 : f32 to vector<8x1xf32>
    %399 = arith.mulf %397, %398 : vector<8x1xf32>
    %400 = arith.addf %399, %392 : vector<8x1xf32>
    %401 = arith.subf %160, %28 : vector<8x3xf32>
    %402 = vector.shape_cast %400 : vector<8x1xf32> to vector<1x8x1xf32>
    %cst_109 = arith.constant dense<0.000000e+00> : vector<1xf32>
    %403 = vector.multi_reduction <add>, %402, %cst_109 [1, 2] : vector<1x8x1xf32> to vector<1xf32>
    %404 = vector.shape_cast %403 : vector<1xf32> to vector<1x1x1xf32>
    %405 = vector.extract %404[0, 0, 0] : f32 from vector<1x1x1xf32>
    %406 = vector.broadcast %405 : f32 to vector<1x1xf32>
    %cst_110 = arith.constant 1.250000e-01 : f32
    %407 = vector.broadcast %cst_110 : f32 to vector<1x1xf32>
    %408 = arith.mulf %406, %407 : vector<1x1xf32>
    %c0_111 = arith.constant 0 : index
    %c0_112 = arith.constant 0 : index
    %409 = vector.load %arg20[%c0_111, %c0_112] : memref<1x1xf32, #tpu.memory_space<vmem>>, vector<1x1xf32>
    tpu.vector_store %arg20[%c0_111, %c0_112], %408 {strides = array<i32>} : memref<1x1xf32, #tpu.memory_space<vmem>>, vector<1x1xf32>,
    %410 = arith.mulf %401, %401 : vector<8x3xf32>
    %411 = vector.shape_cast %410 : vector<8x3xf32> to vector<1x8x3xf32>
    %cst_113 = arith.constant dense<0.000000e+00> : vector<1xf32>
    %412 = vector.multi_reduction <add>, %411, %cst_113 [1, 2] : vector<1x8x3xf32> to vector<1xf32>
    %413 = vector.shape_cast %412 : vector<1xf32> to vector<1x1x1xf32>
    %414 = vector.extract %413[0, 0, 0] : f32 from vector<1x1x1xf32>
    %415 = vector.broadcast %414 : f32 to vector<1x1xf32>
    %cst_114 = arith.constant 0.0416666679 : f32
    %416 = vector.broadcast %cst_114 : f32 to vector<1x1xf32>
    %417 = arith.mulf %415, %416 : vector<1x1xf32>
    %c0_115 = arith.constant 0 : index
    %c0_116 = arith.constant 0 : index
    %418 = vector.load %arg21[%c0_115, %c0_116] : memref<1x1xf32, #tpu.memory_space<vmem>>, vector<1x1xf32>
    tpu.vector_store %arg21[%c0_115, %c0_116], %417 {strides = array<i32>} : memref<1x1xf32, #tpu.memory_space<vmem>>, vector<1x1xf32>,
    return
  }
}

</mosaic_0001>

<bundles_post_ra>
// kernel: tpu_custom_call.1
= control target key start
LH: loop header
LB: loop body
LE: loop exit
PB: predicated region body
PF: predicated region fallthrough
CT: control target
= control target key end

     0   :  { %s1377_s0 = inlined_call_operand.vmem [shape: s32[8,1], index: 0, kind: input, shape index: {}]   ;;  %s1378_s1 = inlined_call_operand.vmem [shape: s32[8,1], index: 1, kind: input, shape index: {}]   ;;  %s1379_s2 = inlined_call_operand.vmem [shape: f32[8,3], index: 2, kind: input, shape index: {}]   ;;  %s1380_s3 = inlined_call_operand.vmem [shape: s32[8,3], index: 3, kind: input, shape index: {}]   ;;  %s1381_s4 = inlined_call_operand.vmem [shape: f32[8,3], index: 4, kind: input, shape index: {}]   ;;  %s1382_s5 = inlined_call_operand.vmem [shape: f32[8,12], index: 5, kind: input, shape index: {}]   ;;  %s1383_s6 = inlined_call_operand.vmem [shape: f32[10,8], index: 6, kind: input, shape index: {}]   ;;  %s1384_s7 = inlined_call_operand.vmem [shape: f32[1,12], index: 7, kind: input, shape index: {}]   ;;  %s1385_s8 = inlined_call_operand.vmem [shape: f32[3,12], index: 8, kind: input, shape index: {}]   ;;  %s1386_s9 = inlined_call_operand.vmem [shape: f32[12,3], index: 9, kind: input, shape index: {}]   ;;  %s1387_s10 = inlined_call_operand.vmem [shape: s32[1,12], index: 10, kind: input, shape index: {}]   ;;  %s1388_s11 = inlined_call_operand.vmem [shape: f32[3,32], index: 11, kind: input, shape index: {}]   ;;  %s1389_s12 = inlined_call_operand.vmem [shape: f32[12,32], index: 12, kind: input, shape index: {}]   ;;  %s1390_s13 = inlined_call_operand.vmem [shape: f32[1,32], index: 13, kind: input, shape index: {}]   ;;  %s1391_s14 = inlined_call_operand.vmem [shape: f32[32,3], index: 14, kind: input, shape index: {}]   ;;  %s1392_s15 = inlined_call_operand.vmem [shape: f32[32,12], index: 15, kind: input, shape index: {}]   ;;  %s1393_s16 = inlined_call_operand.vmem [shape: f32[1,3], index: 16, kind: input, shape index: {}]   ;;  %s1394_s17 = inlined_call_operand.vmem [shape: f32[1,12], index: 17, kind: input, shape index: {}]   ;;  %s1395_s18 = inlined_call_operand.vmem [shape: f32[10,32], index: 18, kind: input, shape index: {}]   ;;  %s1396_s19 = inlined_call_operand.vmem [shape: f32[2,32], index: 19, kind: input, shape index: {}]   ;;  %s1397_s20 = inlined_call_operand.hbm [shape: f32[1,1], index: 20, kind: output, shape index: {0}]   ;;  %s1398_s21 = inlined_call_operand.hbm [shape: f32[1,1], index: 21, kind: output, shape index: {1}]  }
   0x1   :  { %1399 = sst [smem:[#allocation8_spill]] %s1377_s0 }
   0x2   :  { %1400 = sst [smem:[#allocation9_spill]] %s1378_s1 }
   0x3   :  { %1401 = sst [smem:[#allocation10_spill]] %s1379_s2 }
   0x4   :  { %1402 = sst [smem:[#allocation11_spill]] %s1380_s3 }
   0x5   :  { %1403 = sst [smem:[#allocation12_spill]] %s1381_s4 }
   0x6   :  { %1404 = sst [smem:[#allocation13_spill]] %s1382_s5 }
   0x7   :  { %27 = vsyncpa [#allocation3], 0  ;;  %s1405_s26 = sld [smem:[#allocation8_spill]]  ;;  %vm96_vm0 = vcmask 1041408   ;;  %v979_v2 = vmov 0   ;;  %v980_v3 = vmov 1  }
   0x8   :  { %s1406_s28 = sld [smem:[#allocation11_spill]]  ;;  %852 = vset.pattern.permute.xlu0 %v979_v2  ;;  %853 = vset.pattern.permute.xlu1 %v980_v3  ;;  %v91_v4 = vld [vmem:[%s1383_s6 + $0x8] sm:$0x3] }
   0x9   :  { %v234_v5 = vld [vmem:[%s1395_s18 + $0x8] sm:$0x3]  ;;  %809 = vmatpush.msk.msra.mxu0 %vm96_vm0, %v91_v4 }
   0xa   :  { %815 = vmatpush.msk.msra.mxu1 %vm96_vm0, %v234_v5 }
   0xd   :  { %v74_v0 = vld [vmem:[%s1405_s26] sm:$0xff] }
   0xe   :  { %v134_v1 = vld [vmem:[%s1406_s28] sm:$0xff]  ;;  %79 = vperm.xlu0 %852, %v74_v0  }
   0xf   :  { %146 = vperm.xlu1 %853, %v134_v1  }
  0x10   :  { %28 = vsyncpa [#allocation5], 0  ;;  %v981_v6 = vmov 2   ;;  %v90_v7 = vld [vmem:[%s1383_s6] sm:$0xff]  ;;  %v76_v9 = vlaneseq  ;;  %vm92_vm1 = vcmask 80896   ;;  %v982_v12 = vmov 0.0  }
  0x11   :  { %855 = vset.pattern.permute.xlu2 %v981_v6  ;;  %v233_v8 = vld [vmem:[%s1395_s18] sm:$0xff]  ;;  %115 = vmatpush.msra.mxu0 %v90_v7  ;;  %v983_v15 = vmov 3   ;;  %s1407_s25 = sld [smem:[#allocation13_spill]]  ;;  %vm205_vm10 = vcmask 97280   ;;  %vm292_vm11 = vcmask 1043456   ;;  %vm320_vm12 = vcmask 1042432  }
  0x12   :  { %253 = vmatpush.msra.mxu1 %v233_v8  ;;  %v1121_v10 = vand.u32 127, %v76_v9  ;;  %v866_v17 = vld [vmem:[%s1387_s10] ss:$0 sm:$0xff]  ;;  %s1414_s29 = sld [smem:[#allocation9_spill]]  ;;  %vm259_vm14 = vcmask 15360   ;;  %s782_s26 = sshll.u32 %s1397_s20, 4  ;;  %s783_s26 = int_to_ptr.hbm [resolvable:$true] %s782_s26 }
  0x13   :  { %v1140_v19 = vld [vmem:[%s1385_s8] sm:$0x7]  ;;  %s1416_s2 = sld [smem:[#allocation12_spill]]  ;;  %s989_s27 = smov [#allocation4]  }
  0x14   :  { %v1143_v21 = vperm.slane %v1140_v19, 1  ;;  %v1146_v22 = vperm.slane %v1140_v19, 0  ;;  %v1153_v27 = vperm.slane %v1140_v19, 2  ;;  %v1165_v39 = vld [vmem:[%s1384_s7] ss:$0 sm:$0xff]  ;;  %vm200_vm6 = vcmp.gt.f32.partialorder %v1140_v19, 0.0 }
  0x15   :  { %v201_v56 = vsel %vm200_vm6, 1, %v979_v2  ;;  %s791_s3 = sshll.u32 %s989_s27, 4  ;;  %s793_s4 = sshll.u32 %s1398_s21, 4  ;;  %s792_s3 = int_to_ptr.vmem [resolvable:$true] %s791_s3  ;;  %s794_s4 = int_to_ptr.hbm [resolvable:$true] %s793_s4 }
  0x16   :  { %136 = vperm.xlu0 %852, %v134_v1   ;;  %v219_v58 = vperm.slane %v201_v56, 2  ;;  %v211_v59 = vperm.slane %v201_v56, 1  ;;  %v202_v60 = vperm.slane %v201_v56, 0 }
  0x17   :  { %854 = vset.pattern.permute.xlu1 %v981_v6  ;;  %v190_v32 = vld [vmem:[%s1407_s25] sm:$0xff] }
  0x18   :  { %155 = vperm.xlu1 %854, %v134_v1   ;;  %v191_v34 = vadd.f32 1e-30, %v190_v32  ;;  %vm1171_vm7 = vcmp.eq.s32.totalorder %v219_v58, 1  ;;  %vm1175_vm8 = vcmp.eq.s32.totalorder %v211_v59, 1  ;;  %vm1179_vm9 = vcmp.eq.s32.totalorder %v202_v60, 1 }
  0x20   :  { %858 = vset.pattern.permute.xlu1 %v980_v3 }
  0x80   :  { %v80_v11 = vpop.permute.xlu0 %79 }
  0x81   :  { %vm81_vm2 = vcmp.eq.s32.totalorder %v1121_v10, %v80_v11  ;;  %v147_v16 = vpop.permute.xlu1 %146 }
  0x82   :  { %v1125_v13 = vsel %vm81_vm2, 1.0, %v982_v12  ;;  %vm148_vm3 = vcmp.eq.s32.totalorder %v147_v16, %v866_v17  ;;  %v288_v16 = vld [vmem:[%s1389_s12 + $0x8] sm:$0xf]  ;;  %vm746_vm2 = vcmask 7168  }
  0x83   :  { %810 = vmatmul.msk.f32.vlgmr.msra.gmra.mxu0 %vm92_vm1, %v1125_v13  ;;  %816 = vmatmul.msk.f32.vlgmr.msra.gmra.mxu1 %vm92_vm1, %v1125_v13  ;;  %v812_v23 = vsel %vm148_vm3, 1.0, %v982_v12  ;;  %vm360_vm1 = vcmask 261120   ;;  %vm759_vm3 = vcmask 0  }
  0x84   :  { %v152_v25 = vmul.f32 %v812_v23, %v1143_v21  ;;  %819 = vmatpush.msk.msra.mxu3 %vm292_vm11, %v288_v16 }
  0x88   :  { %v137_v18 = vpop.permute.xlu0 %136 }
  0x89   :  { %vm139_vm4 = vcmp.eq.s32.totalorder %v137_v18, %v866_v17  ;;  %v258_v18 = vld [vmem:[%s1396_s19] sm:$0x3]  ;;  %s1415_s19 = sld [smem:[#allocation10_spill]] }
  0x8a   :  { %v156_v20 = vpop.permute.xlu1 %155  ;;  %v811_v24 = vsel %vm139_vm4, 1.0, %v982_v12  ;;  %817 = vmatpush.msk.msra.mxu2 %vm96_vm0, %v258_v18  ;;  %vm316_vm0 = vcmask 23552   ;;  %v987_v18 = vmov 5  }
  0x8b   :  { %vm157_vm5 = vcmp.eq.s32.totalorder %v156_v20, %v866_v17  ;;  %v143_v26 = vmul.f32 %v811_v24, %v1146_v22  ;;  %v287_v17 = vld [vmem:[%s1389_s12] sm:$0xff] }
  0x8c   :  { %v813_v28 = vsel %vm157_vm5, 1.0, %v982_v12  ;;  %311 = vmatpush.msra.mxu3 %v287_v17  ;;  %v286_v20 = vld [vmem:[%s1388_s11] sm:$0x7] }
  0x8d   :  { %v153_v29 = vadd.f32 %v152_v25, %v143_v26  ;;  %v161_v30 = vmul.f32 %v813_v28, %v1153_v27  ;;  %821 = vmatpush.msk.msrb.mxu2 %vm320_vm12, %v286_v20  ;;  %v536_v20 = vsub.f32 1.0, %v1125_v13 }
  0x8f   :  { %v162_v31 = vadd.f32 %v161_v30, %v153_v29 }
  0x91   :  { %v163_v33 = vmax.f32 %v162_v31, 1e-30 }
  0x93   :  { %871 = vlog2.f32 %v163_v33 }
  0x94   :  { %873 = vlog2.f32 %v191_v34 }
  0x99   :  { %v872_v36 = vpop.eup %871 }
  0x9a   :  { %v874_v37 = vpop.eup %873  ;;  %v1160_v38 = vmul.f32 0.6931472, %v872_v36 }
  0x9b   :  { %v193_v42 = vmul.f32 0.6931472, %v874_v37 }
  0x9d   :  { %v194_v45 = vsub.f32 0.0, %v193_v42 }
  0x9f   :  { %v195_v50 = vadd.f32 1e-30, %v194_v45  ;;  %v387_v45 = vld [vmem:[%s1392_s15 + $0x18] sm:$0xff] }
  0xa0   :  { %404 = vmatpush.msrb.mxu1 %v387_v45 }
 0x100   :  { %v1129_v14 = vpop.f32.mrf.mxu0  ;;  %v255_v59 = vpop.f32.mrf.mxu1 }
 0x101   :  { %167 = vperm.xlu2 %855, %v1129_v14  }
 0x109   :  { %856 = vset.pattern.permute.xlu2 %v983_v15  ;;  %v75_v15 = vld [vmem:[%s1414_s29] sm:$0xff] }
 0x10a   :  { %172 = vperm.xlu2 %856, %v1129_v14  }
 0x112   :  { %857 = vset.pattern.permute.xlu2 %v979_v2 }
 0x15b   :  { %v168_v35 = vpop.permute.xlu2 %167 }
 0x15c   :  { %v170_v41 = vadd.f32 %v168_v35, %v1160_v38 }
 0x164   :  { %v173_v40 = vpop.permute.xlu2 %172 }
 0x165   :  { %v178_v43 = vadd.f32 %v1165_v39, %v173_v40 }
 0x167   :  { %v179_v44 = vmax.f32 %v170_v41, %v178_v43 }
 0x169   :  { %v180_v46 = vsub.f32 %v170_v41, %v179_v44  ;;  %v183_v47 = vsub.f32 %v178_v43, %v179_v44 }
 0x16b   :  { %v181_v48 = vmul.f32 1.442695, %v180_v46  ;;  %v184_v49 = vmul.f32 1.442695, %v183_v47  ;;  %v355_v46 = vld [vmem:[%s1391_s14 + $0x18] sm:$0xff]  ;;  %v386_v47 = vld [vmem:[%s1392_s15 + $0x10] sm:$0xff] }
 0x16c   :  { %376 = vmatpush.msrb.mxu0 %v355_v46  ;;  %405 = vmatpush.msrb.mxu1 %v386_v47  ;;  %v717_v46 = vadd.f32 -1.0793998, %v1160_v38 }
 0x16d   :  { %875 = vpow2.f32 %v181_v48  ;;  %v354_v48 = vld [vmem:[%s1391_s14 + $0x10] sm:$0xff] }
 0x16e   :  { %877 = vpow2.f32 %v184_v49  ;;  %377 = vmatpush.msrb.mxu0 %v354_v48  ;;  %v385_v49 = vld [vmem:[%s1392_s15 + $0x8] sm:$0xff] }
 0x16f   :  { %879 = vlog2.f32 %v195_v50  ;;  %v353_v50 = vld [vmem:[%s1391_s14 + $0x8] sm:$0xff]  ;;  %406 = vmatpush.msrb.mxu1 %v385_v49 }
 0x170   :  { %378 = vmatpush.msrb.mxu0 %v353_v50 }
 0x173   :  { %v876_v51 = vpop.eup %875 }
 0x174   :  { %v878_v52 = vpop.eup %877 }
 0x175   :  { %v186_v53 = vadd.f32 %v878_v52, %v876_v51  ;;  %v880_v54 = vpop.eup %879  ;;  %v384_v51 = vld [vmem:[%s1392_s15] sm:$0xff] }
 0x176   :  { %v197_v55 = vmul.f32 0.6931472, %v880_v54  ;;  %v352_v52 = vld [vmem:[%s1391_s14] sm:$0xff]  ;;  %407 = vmatpush.msrb.mxu1 %v384_v51 }
 0x177   :  { %881 = vlog2.f32 %v186_v53  ;;  %379 = vmatpush.msrb.mxu0 %v352_v52  ;;  %v868_v54 = vld [vmem:[%s1390_s13] ss:$0 sm:$0xff] }
 0x178   :  { %v198_v61 = vsub.f32 0.0, %v197_v55  ;;  %831 = vmatpush.msk.msra.mxu1 %vm320_vm12, %v1140_v19 }
 0x17d   :  { %v882_v57 = vpop.eup %881 }
 0x17e   :  { %v188_v62 = vmul.f32 0.6931472, %v882_v57 }
 0x180   :  { %v189_v63 = vadd.f32 %v188_v62, %v179_v44 }
 0x182   :  { %v199_v4 = vadd.f32 %v198_v61, %v189_v63  ;;  %v984_v63 = vmov 6  }
 0x184   :  { %v221_v5 = vsel %vm1171_vm7, %v199_v4, -1e+30  ;;  %v213_v6 = vsel %vm1175_vm8, %v199_v4, -1e+30  ;;  %v204_v7 = vsel %vm1179_vm9, %v199_v4, -1e+30 }
 0x185   :  { %v222_v8 = vsel %vm205_vm10, %v221_v5, -inf  ;;  %v214_v9 = vsel %vm205_vm10, %v213_v6, -inf  ;;  %v206_v11 = vsel %vm205_vm10, %v204_v7, -inf  ;;  %v870_v5 = vld [vmem:[%s1394_s17] ss:$0 sm:$0xff] }
 0x186   :  { %223 = vmax.xlane.f32.xlu2 %v222_v8  ;;  %215 = vmax.xlane.f32.xlu1 %v214_v9 }
 0x187   :  { %207 = vmax.xlane.f32.xlu0 %v206_v11 }
 0x19b   :  { %124 = vperm.xlu0 %852, %v1129_v14  }
 0x19e   :  { %85 = vperm.xlu2 %857, %v75_v15  }
 0x19f   :  { %129 = vperm.xlu1 %858, %v1129_v14  }
 0x1a3   :  { %859 = vset.pattern.permute.xlu0 %v984_v63 }
 0x1f9   :  { %v224_v23 = vpop.xlane.xlu2 %223  ;;  %v216_v24 = vpop.xlane.xlu1 %215 }
 0x1fa   :  { %v217_v25 = vmul.f32 %v216_v24, %v1143_v21  ;;  %v208_v26 = vpop.xlane.xlu0 %207  ;;  %v225_v29 = vmul.f32 %v224_v23, %v1153_v27  ;;  %v71_v23 = vld [vmem:[%s1386_s9 + $0x8] sm:$0xf]  ;;  %v70_v24 = vld [vmem:[%s1386_s9] sm:$0xff] }
 0x1fb   :  { %v209_v28 = vmul.f32 %v208_v26, %v1146_v22  ;;  %825 = vmatpush.msk.msrb.mxu3 %vm292_vm11, %v71_v23  ;;  %829 = vmatpush.msk.msra.mxu0 %vm292_vm11, %v71_v23 }
 0x1fd   :  { %v218_v30 = vadd.f32 %v217_v25, %v209_v28  ;;  %454 = vmatpush.msrb.mxu3 %v70_v24  ;;  %584 = vmatpush.msra.mxu0 %v70_v24 }
 0x1ff   :  { %v226_v31 = vadd.f32 %v225_v29, %v218_v30 }
 0x201   :  { %vm227_vm13 = vcmp.eq.f32.partialorder %v199_v4, %v226_v31  ;;  %v86_v32 = vpop.permute.xlu2 %85  ;;  %v985_v4 = vmov 7  }
 0x202   :  { %vm87_vm15 = vcmp.eq.s32.totalorder %v1121_v10, %v86_v32  ;;  %v814_v33 = vsel %vm227_vm13, 1.0, %v982_v12  ;;  %v120_v10 = vld [vmem:[%s1415_s19] sm:$0xff]  ;;  %860 = vset.pattern.permute.xlu2 %v985_v4 }
 0x203   :  { %v808_v34 = vsel %vm87_vm15, 1.0, %v982_v12  ;;  %v230_v35 = vmax.f32 %v814_v33, 1e-30  ;;  %v1230_v12 = vld [vmem:[%s1416_s2] sm:$0xff] }
 0x204   :  { %818 = vmatmul.msk.f32.vlgmr.msra.gmra.mxu2 %vm259_vm14, %v808_v34 }
 0x205   :  { %883 = vlog2.f32 %v230_v35  ;;  %827 = vmatpush.msk.msra.mxu2 %vm320_vm12, %v1140_v19 }
 0x20b   :  { %v884_v36 = vpop.eup %883 }
 0x20c   :  { %v1220_v37 = vmul.f32 0.6931472, %v884_v36 }
 0x20d   :  { %v125_v40 = vpop.permute.xlu0 %124 }
 0x20e   :  { %820 = vmatmul.msk.f32.vlgmr.msra.gmra.mxu3 %vm205_vm10, %v1220_v37  ;;  %v127_v42 = vmul.f32 %v125_v40, %v120_v10  ;;  %v72_v10 = vld [vmem:[%s1384_s7] sm:$0x1] }
 0x20f   :  { %833 = vmatpush.msk.msra.mxu3 %vm292_vm11, %v71_v23 }
 0x211   :  { %v130_v41 = vpop.permute.xlu1 %129  ;;  %671 = vmatpush.msra.mxu3 %v70_v24 }
 0x212   :  { %v132_v43 = vmul.f32 %v130_v41, %v1230_v12  ;;  %v718_v41 = vadd.f32 -0.41521153, %v72_v10 }
 0x214   :  { %v133_v44 = vadd.f32 %v132_v43, %v127_v42  ;;  %v720_v45 = vperm.slane %v718_v41, 0 }
 0x216   :  { %822 = vmatmul.msk.f32.vlgmr.msrb.gmra.mxu2 %vm316_vm0, %v133_v44  ;;  %v1316_v52 = vmax.f32 %v717_v46, %v720_v45 }
 0x217   :  { %835 = vmatpush.msk.msrb.mxu2 %vm320_vm12, %v1140_v19  ;;  %v986_v19 = vmov 4  }
 0x218   :  { %861 = vset.pattern.permute.xlu1 %v986_v19 }
 0x287   :  { %v283_v53 = vpop.f32.mrf.mxu2 }
 0x291   :  { %v313_v55 = vpop.f32.mrf.mxu3 }
 0x299   :  { %v341_v56 = vpop.f32.mrf.mxu2 }
 0x29a   :  { %v342_v57 = vadd.f32 %v341_v56, %v313_v55 }
 0x29c   :  { %v348_v58 = vadd.f32 %v868_v54, %v342_v57  ;;  %v723_v57 = vsub.f32 %v717_v46, %v1316_v52 }
 0x29e   :  { %v349_v60 = vadd.f32 %v348_v58, %v255_v59 }
 0x2a0   :  { %v350_v61 = vadd.f32 %v349_v60, %v283_v53  ;;  %v726_v60 = vsub.f32 %v720_v45, %v1316_v52 }
 0x2a2   :  { %v351_v62 = vmax.f32 %v350_v61, 0.0 }
 0x2a4   :  { %823 = vmatmul.msk.f32.vlgmr.msrb.gmra.mxu0 %vm360_vm1, %v351_v62  ;;  %824 = vmatmul.msk.f32.vlgmr.msrb.gmra.mxu1 %vm360_vm1, %v351_v62 }
 0x321   :  { %v409_v6 = vpop.f32.mrf.mxu1 }
 0x322   :  { %v1268_v7 = vadd.f32 %v870_v5, %v409_v6  ;;  %v727_v5 = vmul.f32 1.442695, %v726_v60 }
 0x324   :  { %v424_v8 = vsel %vm1171_vm7, %v1268_v7, -1e+30  ;;  %v418_v9 = vsel %vm1175_vm8, %v1268_v7, -1e+30  ;;  %v412_v11 = vsel %vm1179_vm9, %v1268_v7, -1e+30 }
 0x325   :  { %v425_v15 = vsel %vm205_vm10, %v424_v8, -inf  ;;  %v419_v16 = vsel %vm205_vm10, %v418_v9, -inf  ;;  %v413_v17 = vsel %vm205_vm10, %v412_v11, -inf }
 0x326   :  { %426 = vmax.xlane.f32.xlu1 %v425_v15  ;;  %420 = vmax.xlane.f32.xlu2 %v419_v16 }
 0x327   :  { %414 = vmax.xlane.f32.xlu0 %v413_v17 }
 0x33b   :  { %511 = vperm.xlu0 %859, %v1129_v14  }
 0x33e   :  { %516 = vperm.xlu2 %860, %v1129_v14  }
 0x33f   :  { %490 = vperm.xlu1 %861, %v1129_v14  }
 0x343   :  { %865 = vset.pattern.permute.xlu0 %v979_v2 }
 0x346   :  { %862 = vset.pattern.permute.xlu2 %v987_v18 }
 0x347   :  { %863 = vset.pattern.permute.xlu1 %v979_v2  ;;  %495 = vperm.xlu2 %862, %v1129_v14  }
 0x348   :  { %532 = vperm.xlu1 %863, %v1125_v13  }
 0x34f   :  { %864 = vset.pattern.permute.xlu2 %v979_v2 }
 0x350   :  { %539 = vperm.xlu2 %864, %v536_v20  }
 0x399   :  { %v421_v2 = vpop.xlane.xlu2 %420  ;;  %v427_v14 = vpop.xlane.xlu1 %426 }
 0x39a   :  { %v422_v25 = vmul.f32 %v421_v2, %v1143_v21  ;;  %v415_v26 = vpop.xlane.xlu0 %414  ;;  %v428_v29 = vmul.f32 %v427_v14, %v1153_v27 }
 0x39b   :  { %v416_v28 = vmul.f32 %v415_v26, %v1146_v22 }
 0x39d   :  { %v423_v30 = vadd.f32 %v422_v25, %v416_v28 }
 0x39f   :  { %v429_v31 = vadd.f32 %v428_v29, %v423_v30 }
 0x3a1   :  { %v430_v32 = vsub.f32 %v1268_v7, %v429_v31  ;;  %v517_v36 = vpop.permute.xlu2 %516 }
 0x3a2   :  { %v519_v43 = vadd.f32 %v1165_v39, %v517_v36 }
 0x3a3   :  { %v431_v33 = vmul.f32 1.442695, %v430_v32 }
 0x3a5   :  { %885 = vpow2.f32 %v431_v33 }
 0x3a9   :  { %v496_v47 = vpop.permute.xlu2 %495 }
 0x3aa   :  { %v498_v51 = vadd.f32 %v1165_v39, %v496_v47 }
 0x3ab   :  { %v886_v34 = vpop.eup %885 }
 0x3ac   :  { %826 = vmatmul.msk.f32.vlgmr.msrb.gmra.mxu3 %vm205_vm10, %v886_v34 }
 0x3ad   :  { %v512_v40 = vpop.permute.xlu0 %511 }
 0x3ae   :  { %v514_v42 = vadd.f32 %v512_v40, %v1160_v38 }
 0x3b0   :  { %v520_v48 = vmax.f32 %v514_v42, %v519_v43 }
 0x3b1   :  { %v491_v44 = vpop.permute.xlu1 %490  ;;  %v540_v45 = vpop.permute.xlu2 %539 }
 0x3b2   :  { %v493_v50 = vadd.f32 %v491_v44, %v1220_v37  ;;  %v521_v53 = vsub.f32 %v514_v42, %v520_v48  ;;  %v524_v54 = vsub.f32 %v519_v43, %v520_v48  ;;  %v724_v37 = vmul.f32 1.442695, %v723_v57 }
 0x3b4   :  { %v499_v55 = vmax.f32 %v493_v50, %v498_v51  ;;  %v522_v58 = vmul.f32 1.442695, %v521_v53  ;;  %v525_v61 = vmul.f32 1.442695, %v524_v54 }
 0x3b6   :  { %v500_v62 = vsub.f32 %v493_v50, %v499_v55  ;;  %v503_v63 = vsub.f32 %v498_v51, %v499_v55 }
 0x3b8   :  { %v501_v6 = vmul.f32 1.442695, %v500_v62  ;;  %v504_v8 = vmul.f32 1.442695, %v503_v63 }
 0x3ba   :  { %v533_v46 = vpop.permute.xlu1 %532 }
 0x3bb   :  { %v535_v54 = vmul.f32 %v533_v46, %v1160_v38 }
 0x42f   :  { %v456_v35 = vpop.f32.mrf.mxu3 }
 0x430   :  { %828 = vmatmul.msk.f32.vlgmr.msra.gmra.mxu2 %vm316_vm0, %v456_v35 }
 0x4b3   :  { %v482_v49 = vpop.f32.mrf.mxu2 }
 0x4b4   :  { %887 = vlog2.f32 %v482_v49 }
 0x4b5   :  { %889 = vpow2.f32 %v522_v58 }
 0x4b6   :  { %891 = vpow2.f32 %v525_v61 }
 0x4b7   :  { %893 = vpow2.f32 %v724_v37 }
 0x4b8   :  { %895 = vpow2.f32 %v727_v5 }
 0x4b9   :  { %897 = vpow2.f32 %v501_v6 }
 0x4ba   :  { %v888_v56 = vpop.eup %887  ;;  %899 = vpow2.f32 %v504_v8 }
 0x4bb   :  { %v486_v59 = vmul.f32 0.6931472, %v888_v56  ;;  %v890_v15 = vpop.eup %889 }
 0x4bc   :  { %v892_v18 = vpop.eup %891 }
 0x4bd   :  { %v487_v4 = vadd.f32 %v486_v59, %v429_v31  ;;  %v894_v2 = vpop.eup %893  ;;  %v527_v25 = vadd.f32 %v892_v18, %v890_v15 }
 0x4be   :  { %v896_v14 = vpop.eup %895 }
 0x4bf   :  { %v488_v19 = vsub.f32 %v1268_v7, %v487_v4  ;;  %v898_v7 = vpop.eup %897  ;;  %v729_v28 = vadd.f32 %v896_v14, %v894_v2 }
 0x4c0   :  { %v900_v26 = vpop.eup %899 }
 0x4c1   :  { %v616_v9 = vadd.f32 %v512_v40, %v488_v19  ;;  %v506_v29 = vadd.f32 %v900_v26, %v898_v7  ;;  %v628_v49 = vmul.f32 %v533_v46, %v488_v19 }
 0x4c3   :  { %v617_v11 = vmax.f32 %v616_v9, %v519_v43 }
 0x4c5   :  { %v618_v16 = vsub.f32 %v616_v9, %v617_v11  ;;  %v621_v17 = vsub.f32 %v519_v43, %v617_v11 }
 0x4c7   :  { %v619_v23 = vmul.f32 1.442695, %v618_v16  ;;  %v622_v24 = vmul.f32 1.442695, %v621_v17 }
 0x4c9   :  { %901 = vpow2.f32 %v619_v23 }
 0x4ca   :  { %903 = vpow2.f32 %v622_v24 }
 0x4cb   :  { %905 = vlog2.f32 %v527_v25 }
 0x4cc   :  { %907 = vlog2.f32 %v729_v28 }
 0x4cd   :  { %909 = vlog2.f32 %v506_v29 }
 0x4cf   :  { %v902_v30 = vpop.eup %901 }
 0x4d0   :  { %v904_v31 = vpop.eup %903 }
 0x4d1   :  { %v624_v32 = vadd.f32 %v904_v31, %v902_v30  ;;  %v906_v33 = vpop.eup %905 }
 0x4d2   :  { %v529_v34 = vmul.f32 0.6931472, %v906_v33  ;;  %v908_v35 = vpop.eup %907 }
 0x4d3   :  { %911 = vlog2.f32 %v624_v32  ;;  %v910_v36 = vpop.eup %909  ;;  %v731_v42 = vmul.f32 0.6931472, %v908_v35 }
 0x4d4   :  { %v530_v40 = vadd.f32 %v529_v34, %v520_v48  ;;  %v508_v43 = vmul.f32 0.6931472, %v910_v36 }
 0x4d5   :  { %v732_v51 = vadd.f32 %v731_v42, %v1316_v52  ;;  %v710_v42 = vmul.f32 1.442695, %v1160_v38 }
 0x4d6   :  { %v542_v47 = vmul.f32 %v540_v45, %v530_v40  ;;  %v509_v53 = vadd.f32 %v508_v43, %v499_v55 }
 0x4d7   :  { %v733_v59 = vmul.f32 1.442695, %v732_v51 }
 0x4d8   :  { %v543_v57 = vadd.f32 %v542_v47, %v535_v54  ;;  %v869_v54 = vld [vmem:[%s1393_s16] ss:$0 sm:$0xff]  ;;  %s988_s16 = smov [#allocation2]  }
 0x4d9   :  { %v912_v10 = vpop.eup %911  ;;  %913 = vpow2.f32 %v733_v59  ;;  %s780_s8 = sshll.u32 %s988_s16, 4  ;;  %s781_s8 = int_to_ptr.vmem [resolvable:$true] %s780_s8 }
 0x4da   :  { %v626_v41 = vmul.f32 0.6931472, %v912_v10  ;;  %v544_v63 = vadd.f32 %v543_v57, %v509_v53  ;;  %v381_v10 = vpop.f32.mrf.mxu0 }
 0x4db   :  { %v382_v38 = vadd.f32 %v869_v54, %v381_v10 }
 0x4dc   :  { %v627_v44 = vadd.f32 %v626_v41, %v617_v11  ;;  %v557_v4 = vsel %vm1171_vm7, %v544_v63, -1e+30  ;;  %v551_v37 = vsel %vm1175_vm8, %v544_v63, -1e+30  ;;  %v545_v19 = vsel %vm1179_vm9, %v544_v63, -1e+30 }
 0x4dd   :  { %v558_v5 = vsel %vm205_vm10, %v557_v4, -inf  ;;  %v552_v6 = vsel %vm205_vm10, %v551_v37, -inf  ;;  %v546_v9 = vsel %vm205_vm10, %v545_v19, -inf  ;;  %v735_v11 = vsub.f32 %v732_v51, %v1165_v39 }
 0x4de   :  { %v629_v50 = vmul.f32 %v627_v44, %v540_v45 }
 0x4df   :  { %v914_v8 = vpop.eup %913 }
 0x4e0   :  { %v630_v56 = vadd.f32 %v629_v50, %v628_v49  ;;  %v736_v0 = vmul.f32 %v914_v8, %v735_v11 }
 0x4e2   :  { %v1323_v58 = vadd.f32 %v630_v56, %v509_v53  ;;  %v737_v15 = vsel %vm205_vm10, %v736_v0, 0.0 }
 0x4e4   :  { %v644_v48 = vsel %vm1171_vm7, %v1323_v58, -1e+30  ;;  %v638_v60 = vsel %vm1175_vm8, %v1323_v58, -1e+30  ;;  %v632_v52 = vsel %vm1179_vm9, %v1323_v58, -1e+30 }
 0x4e5   :  { %v645_v55 = vsel %vm205_vm10, %v644_v48, -inf  ;;  %v639_v61 = vsel %vm205_vm10, %v638_v60, -inf  ;;  %v633_v62 = vsel %vm205_vm10, %v632_v52, -inf  ;;  %v745_v52 = vsub.f32 %v382_v38, %v1230_v12 }
 0x4e6   :  { %646 = vmax.xlane.f32.xlu2 %v645_v55  ;;  %640 = vmax.xlane.f32.xlu0 %v639_v61 }
 0x4e7   :  { %634 = vmax.xlane.f32.xlu1 %v633_v62  ;;  %v761_v61 = vmul.f32 %v745_v52, %v745_v52 }
 0x4ee   :  { %559 = vmax.xlane.f32.xlu2 %v558_v5  ;;  %553 = vmax.xlane.f32.xlu0 %v552_v6 }
 0x4ef   :  { %547 = vmax.xlane.f32.xlu1 %v546_v9 }
 0x4f6   :  { %738 = vadd.xlane.f32.xlu2 %v737_v15 }
 0x559   :  { %v647_v1 = vpop.xlane.xlu2 %646  ;;  %v641_v16 = vpop.xlane.xlu0 %640 }
 0x55a   :  { %v642_v3 = vmul.f32 %v641_v16, %v1143_v21  ;;  %v635_v17 = vpop.xlane.xlu1 %634  ;;  %v648_v23 = vmul.f32 %v647_v1, %v1153_v27 }
 0x55b   :  { %v636_v18 = vmul.f32 %v635_v17, %v1146_v22 }
 0x55d   :  { %v643_v24 = vadd.f32 %v642_v3, %v636_v18 }
 0x55f   :  { %v649_v2 = vadd.f32 %v648_v23, %v643_v24 }
 0x561   :  { %v650_v14 = vsub.f32 %v1323_v58, %v649_v2  ;;  %v554_v25 = vpop.xlane.xlu0 %553  ;;  %v560_v7 = vpop.xlane.xlu2 %559 }
 0x562   :  { %v555_v39 = vmul.f32 %v554_v25, %v1143_v21  ;;  %v548_v26 = vpop.xlane.xlu1 %547  ;;  %v561_v30 = vmul.f32 %v560_v7, %v1153_v27 }
 0x563   :  { %v651_v28 = vmul.f32 1.442695, %v650_v14  ;;  %v549_v29 = vmul.f32 %v548_v26, %v1146_v22 }
 0x565   :  { %915 = vpow2.f32 %v651_v28  ;;  %v556_v31 = vadd.f32 %v555_v39, %v549_v29 }
 0x567   :  { %v562_v32 = vadd.f32 %v561_v30, %v556_v31 }
 0x569   :  { %v563_v33 = vsub.f32 %v544_v63, %v562_v32  ;;  %v739_v8 = vpop.xlane.xlu2 %738 }
 0x56b   :  { %v916_v34 = vpop.eup %915  ;;  %v564_v35 = vmul.f32 1.442695, %v563_v33 }
 0x56c   :  { %834 = vmatmul.msk.f32.vlgmr.msra.gmra.mxu3 %vm205_vm10, %v916_v34 }
 0x56d   :  { %917 = vpow2.f32 %v564_v35 }
 0x573   :  { %v918_v36 = vpop.eup %917 }
 0x574   :  { %830 = vmatmul.msk.f32.vlgmr.msra.gmra.mxu0 %vm205_vm10, %v918_v36 }
 0x5ef   :  { %v673_v21 = vpop.f32.mrf.mxu3 }
 0x5f0   :  { %836 = vmatmul.msk.f32.vlgmr.msrb.gmra.mxu2 %vm316_vm0, %v673_v21 }
 0x5f1   :  { %v586_v40 = vpop.f32.mrf.mxu0 }
 0x5f2   :  { %832 = vmatmul.msk.f32.vlgmr.msra.gmra.mxu1 %vm316_vm0, %v586_v40 }
 0x66f   :  { %v609_v22 = vpop.f32.mrf.mxu1 }
 0x670   :  { %919 = vlog2.f32 %v609_v22 }
 0x673   :  { %v696_v27 = vpop.f32.mrf.mxu2 }
 0x674   :  { %921 = vlog2.f32 %v696_v27 }
 0x675   :  { %923 = vpow2.f32 %v710_v42 }
 0x676   :  { %v920_v41 = vpop.eup %919 }
 0x677   :  { %v613_v43 = vmul.f32 0.6931472, %v920_v41 }
 0x679   :  { %v614_v44 = vadd.f32 %v613_v43, %v562_v32 }
 0x67a   :  { %v922_v45 = vpop.eup %921 }
 0x67b   :  { %v615_v46 = vsub.f32 %v544_v63, %v614_v44  ;;  %v700_v47 = vmul.f32 0.6931472, %v922_v45  ;;  %v924_v53 = vpop.eup %923 }
 0x67d   :  { %v703_v49 = vmul.f32 1.442695, %v615_v46  ;;  %v701_v50 = vadd.f32 %v700_v47, %v649_v2 }
 0x67f   :  { %925 = vpow2.f32 %v703_v49  ;;  %v702_v51 = vsub.f32 %v1323_v58, %v701_v50  ;;  %v762_v58 = vsel %vm316_vm0, %v761_v61, 0.0 }
 0x681   :  { %v712_v56 = vmul.f32 %v924_v53, %v702_v51  ;;  %v705_v59 = vsub.f32 %v615_v46, %v702_v51 }
 0x683   :  { %v713_v57 = vsel %vm205_vm10, %v712_v56, 0.0 }
 0x684   :  { %714 = vadd.xlane.f32.xlu1 %v713_v57 }
 0x685   :  { %v926_v48 = vpop.eup %925 }
 0x686   :  { %v706_v60 = vmul.f32 %v926_v48, %v705_v59 }
 0x688   :  { %v707_v55 = vsel %vm205_vm10, %v706_v60, 0.0 }
 0x689   :  { %708 = vadd.xlane.f32.xlu0 %v707_v55 }
 0x691   :  { %763 = vadd.xlane.f32.xlu0 %v762_v58 }
 0x6f7   :  { %v715_v62 = vpop.xlane.xlu1 %714 }
 0x6f8   :  { %v716_v63 = vsub.f32 0.0, %v715_v62 }
 0x6fa   :  { %v740_v37 = vmul.f32 %v1125_v13, %v716_v63 }
 0x6fc   :  { %v709_v4 = vpop.xlane.xlu0 %708 }
 0x6fd   :  { %v741_v19 = vmul.f32 %v709_v4, %v536_v20 }
 0x6ff   :  { %v742_v5 = vadd.f32 %v741_v19, %v740_v37 }
 0x701   :  { %v743_v6 = vmul.f32 10.0, %v742_v5 }
 0x703   :  { %v744_v12 = vadd.f32 %v743_v6, %v739_v8 }
 0x704   :  { %v764_v11 = vpop.xlane.xlu0 %763 }
 0x705   :  { %v747_v9 = vsel %vm746_vm2, %v744_v12, 0.0  ;;  %v765_v0 = vrot.slane %v764_v11, 4 }
 0x706   :  { %748 = vadd.xlane.f32.xlu1 %v747_v9 }
 0x707   :  { %v766_v15 = vadd.f32 %v765_v0, %v764_v11 }
 0x709   :  { %v767_v1 = vrot.slane %v766_v15, 2 }
 0x70b   :  { %v768_v18 = vadd.f32 %v767_v1, %v766_v15 }
 0x70d   :  { %v769_v2 = vrot.slane %v768_v18, 1 }
 0x70f   :  { %v770_v14 = vadd.f32 %v769_v2, %v768_v18 }
 0x779   :  { %v749_v16 = vpop.xlane.xlu1 %748 }
 0x77a   :  { %v750_v3 = vrot.slane %v749_v16, 4 }
 0x77c   :  { %v751_v17 = vadd.f32 %v750_v3, %v749_v16 }
 0x77e   :  { %v752_v23 = vrot.slane %v751_v17, 2 }
 0x780   :  { %v753_v24 = vadd.f32 %v752_v23, %v751_v17 }
 0x782   :  { %v754_v13 = vrot.slane %v753_v24, 1 }
 0x784   :  { %v755_v20 = vadd.f32 %v754_v13, %v753_v24 }
 0x786   :  { %837 = vpush %v755_v20 }
 0x787   :  { %839 = vpush %v770_v14 }
 0x7b7   :  { %s838_s28 = spop %837 }
 0x7b8   :  { %v757_v25 = vstv %s838_s28  ;;  %s840_s30 = spop %839 }
 0x7b9   :  { %v758_v7 = vmul.f32 0.125, %v757_v25  ;;  %v772_v39 = vstv %s840_s30 }
 0x7ba   :  { %v773_v26 = vmul.f32 0.041666668, %v772_v39 }
 0x7bb   :  { %760 = vst.msk [vmem:[#allocation2] sm:$0x1] %vm759_vm3, %v758_v7 }
 0x7bc   :  { %774 = vst.msk [vmem:[#allocation4] sm:$0x1] %vm759_vm3, %v773_v26  ;;  %785 = dma.vmem_to_hbm [thread:$0]  %s781_s8, 16, %s783_s26, [#allocation3]  }
 0x7bd   :  { %796 = dma.vmem_to_hbm [thread:$0]  %s792_s3, 16, %s794_s4, [#allocation5]  }
 0x7be   :  { %975 = dma.done.wait [#allocation3], 16  }
 0x7bf   :  { %976 = vsyncadd [#allocation3], 4294967280 }
 0x7c0   :  { %977 = dma.done.wait [#allocation5], 16  }
 0x7c1   :  { %978 = vsyncadd [#allocation5], 4294967280 }
 0x7c2   :  { %805 = vsyncpa [#allocation3], 1 }
 0x7c3   :  { %806 = vsyncpa [#allocation5], 1 }

</bundles_post_ra>
